<compile_context>
chip_gen: v7x
topology: tpu7x:2x2x1
jax: 0.10.0
libtpu: 0.0.40
codegen_flags: <defaults>
</compile_context>

<pallas_src>
import jax
import jax.numpy as jnp
from jax.experimental import pallas as pl
from jax.experimental.pallas import tpu as pltpu


def _scale_fold_matmul_kernel(w_ref, s_ref, x_ref, o_ref):
    # One batch element:  o = (W * s) @ X
    #   w_ref: (Cout, Cin)   1x1-conv weight (shared across the batch grid)
    #   s_ref: (1, Cin)      per-channel scale for this batch element
    #   x_ref: (Cin, HW)     activation, channels-major (pure NCHW reshape)
    #   o_ref: (Cout, HW)    output (masked 196-lane store, cheap at this size)
    ws = (w_ref[...] * s_ref[...]).astype(jnp.bfloat16)   # fold scale in f32, then cast
    xb = x_ref[...].astype(jnp.bfloat16)
    o_ref[...] = jnp.dot(
        ws, xb, preferred_element_type=jnp.float32        # MXU, f32 accumulate
    ).astype(o_ref.dtype)


def mul_conv1x1(x426, x421, weight):
    """Fused (x426 * x421) -> Conv2d(1x1, bias=False).

    x421:   [N, Cin, H, W]      activation
    x426:   [N, Cin, 1, 1]      per-channel scale
    weight: [Cout, Cin, 1, 1]   PyTorch Conv2d weight (or already-squeezed [Cout, Cin])
    returns [N, Cout, H, W]
    """
    N, Cin, H, W = x421.shape
    if weight.ndim == 4:                                   # accept raw Conv2d weight
        weight = weight.reshape(weight.shape[0], weight.shape[1])
    Cout = weight.shape[0]
    HW = H * W

    # Transpose-free layout plumbing: pure reshapes of contiguous NCHW data.
    x_cm = x421.reshape(N, Cin, HW)                        # (N, Cin, HW)
    s_row = x426.reshape(N, 1, Cin)                        # (N, 1, Cin)

    bytes_per = jnp.dtype(x421.dtype).itemsize
    cost = pl.CostEstimate(
        flops=2 * N * Cout * Cin * HW,
        transcendentals=0,
        bytes_accessed=bytes_per * (Cout * Cin + N * Cin + N * Cin * HW + N * Cout * HW),
    )

    out = pl.pallas_call(
        _scale_fold_matmul_kernel,
        out_shape=jax.ShapeDtypeStruct((N, Cout, HW), x421.dtype),
        grid=(N,),
        in_specs=[
            pl.BlockSpec((Cout, Cin), lambda n: (0, 0)),         # weight (resident)
            pl.BlockSpec((None, 1, Cin), lambda n: (n, 0, 0)),   # per-batch scale
            pl.BlockSpec((None, Cin, HW), lambda n: (n, 0, 0)),  # per-batch activation
        ],
        out_specs=pl.BlockSpec((None, Cout, HW), lambda n: (n, 0, 0)),
        compiler_params=pltpu.CompilerParams(
            dimension_semantics=("parallel",)),                  # v7x: shard batch over TCs
        cost_estimate=cost,
    )(weight, s_row, x_cm)

    return out.reshape(N, Cout, H, W)


if __name__ == "__main__":
    key = jax.random.PRNGKey(0)
    k1, k2, k3 = jax.random.split(key, 3)

    # Shapes from the module's forward pass.
    N, Cin, H, W = 1, 960, 14, 14
    Cout = 160

    x421 = jax.random.normal(k1, (N, Cin, H, W), dtype=jnp.float32)
    x426 = jax.random.normal(k2, (N, Cin, 1, 1), dtype=jnp.float32)
    # Deterministic stand-in for Conv2d(960, 160, 1, 1, bias=False).weight
    weight = jax.random.normal(k3, (Cout, Cin, 1, 1), dtype=jnp.float32) * 0.02

    out = jax.jit(mul_conv1x1)(x426, x421, weight)
    out = jax.block_until_ready(out)

    # Reference check (plain JAX, f32): broadcast-mul then 1x1 conv as matmul.
    ref = jnp.einsum("nchw,oc->nohw", x421 * x426, weight.reshape(Cout, Cin))
    assert out.shape == (N, Cout, H, W)
    # bf16 MXU operands with f32 accumulation drift ~0.4% on the 960-deep
    # contraction; well within this tolerance.
    assert jnp.allclose(out, ref, atol=3e-2, rtol=3e-2)

    print("KERNEL_OK")
</pallas_src>

<mosaic_0001>
module attributes {stable_mosaic.version = 11 : i64} {
  func.func @_scale_fold_matmul_kernel(%arg0: i32, %arg1: memref<160x960xf32, #tpu.memory_space<vmem>>, %arg2: memref<1x1x960xf32, #tpu.memory_space<vmem>>, %arg3: memref<1x960x196xf32, #tpu.memory_space<vmem>>, %arg4: memref<1x160x196xf32, #tpu.memory_space<vmem>>) attributes {dimension_semantics = [#tpu.dimension_semantics<parallel>], iteration_bounds = array<i64: 1>, scalar_prefetch = 0 : i64, scratch_operands = 0 : i64, tpu.core_type = #tpu.core_type<tc>, window_params = [{pipeline_mode = #tpu.pipeline_mode<synchronous>, transform_indices = @transform_0, window_bounds = array<i64: 160, 960>}, {transform_indices = @transform_1, window_bounds = array<i64: 1, 1, 960>}, {transform_indices = @transform_2, window_bounds = array<i64: 1, 960, 196>}, {transform_indices = @transform_3, window_bounds = array<i64: 1, 160, 196>}]} {
    %c0 = arith.constant 0 : index
    %c0_0 = arith.constant 0 : index
    %0 = vector.load %arg1[%c0, %c0_0] : memref<160x960xf32, #tpu.memory_space<vmem>>, vector<160x960xf32>
    %c0_1 = arith.constant 0 : index
    %c0_2 = arith.constant 0 : index
    %c0_3 = arith.constant 0 : index
    %1 = vector.load %arg2[%c0_1, %c0_2, %c0_3] : memref<1x1x960xf32, #tpu.memory_space<vmem>>, vector<1x1x960xf32>
    %2 = vector.shape_cast %1 : vector<1x1x960xf32> to vector<1x960xf32>
    %3 = vector.broadcast %2 : vector<1x960xf32> to vector<160x960xf32>
    %4 = arith.mulf %0, %3 : vector<160x960xf32>
    %5 = arith.truncf %4 : vector<160x960xf32> to vector<160x960xbf16>
    %c0_4 = arith.constant 0 : index
    %c0_5 = arith.constant 0 : index
    %c0_6 = arith.constant 0 : index
    %6 = vector.load %arg3[%c0_4, %c0_5, %c0_6] : memref<1x960x196xf32, #tpu.memory_space<vmem>>, vector<1x960x196xf32>
    %7 = vector.shape_cast %6 : vector<1x960x196xf32> to vector<960x196xf32>
    %8 = arith.truncf %7 : vector<960x196xf32> to vector<960x196xbf16>
    %cst = arith.constant dense<0.000000e+00> : vector<160x196xf32>
    %9 = tpu.matmul %5, %8, %cst {dimension_numbers = #tpu.dot_dimension_numbers<[1], [0], [0], [1], [0, 0, 1, 1], [], []>} : vector<160x960xbf16>, vector<960x196xbf16>, vector<160x196xf32> -> vector<160x196xf32>
    %c0_7 = arith.constant 0 : index
    %c0_8 = arith.constant 0 : index
    %c0_9 = arith.constant 0 : index
    %10 = vector.load %arg4[%c0_7, %c0_8, %c0_9] : memref<1x160x196xf32, #tpu.memory_space<vmem>>, vector<1x160x196xf32>
    %11 = vector.shape_cast %10 : vector<1x160x196xf32> to vector<160x196xf32>
    %12 = vector.shape_cast %9 : vector<160x196xf32> to vector<1x160x196xf32>
    tpu.vector_store %arg4[%c0_7, %c0_8, %c0_9], %12 {strides = array<i32>} : memref<1x160x196xf32, #tpu.memory_space<vmem>>, vector<1x160x196xf32>,
    return
  }
  func.func @transform_0(%arg0: i32) -> (i32, i32) {
    %c0_i32 = arith.constant 0 : i32
    %c0_i32_0 = arith.constant 0 : i32
    %c0_i32_1 = arith.constant 0 : i32
    return %c0_i32, %c0_i32_0 : i32, i32
  }
  func.func @transform_1(%arg0: i32) -> (i32, i32, i32) {
    %c0_i32 = arith.constant 0 : i32
    %c0_i32_0 = arith.constant 0 : i32
    %c0_i32_1 = arith.constant 0 : i32
    return %arg0, %c0_i32, %c0_i32_0 : i32, i32, i32
  }
  func.func @transform_2(%arg0: i32) -> (i32, i32, i32) {
    %c0_i32 = arith.constant 0 : i32
    %c0_i32_0 = arith.constant 0 : i32
    %c0_i32_1 = arith.constant 0 : i32
    return %arg0, %c0_i32, %c0_i32_0 : i32, i32, i32
  }
  func.func @transform_3(%arg0: i32) -> (i32, i32, i32) {
    %c0_i32 = arith.constant 0 : i32
    %c0_i32_0 = arith.constant 0 : i32
    %c0_i32_1 = arith.constant 0 : i32
    return %arg0, %c0_i32, %c0_i32_0 : i32, i32, i32
  }
}

</mosaic_0001>

<bundles_post_ra>
// kernel: mul_conv1x1.1
= control target key start
LH: loop header
LB: loop body
LE: loop exit
PB: predicated region body
PF: predicated region fallthrough
CT: control target
= control target key end

     0   :  { %vm817_vm0 = vcmask 523264   ;;  %vm1381_vm1 = vcmask 556032   ;;  %s3136_s2 = inlined_call_operand.vmem [shape: f32[1,960,196], index: 2, kind: input, shape index: {}]   ;;  %s3137_s0 = inlined_call_operand.vmem [shape: f32[160,960], index: 0, kind: input, shape index: {}]   ;;  %s3138_s1 = inlined_call_operand.vmem [shape: f32[1,1,960], index: 1, kind: input, shape index: {}]   ;;  %s3139_s3 = inlined_call_operand.vmem [shape: f32[1,160,196], index: 3, kind: output, shape index: {}]  }
   0x1   :  { %v458_v0 = vld [vmem:[%s3136_s2 + $0x8] sm:$0xff]  ;;  %v460_v1 = vld [vmem:[%s3136_s2 + $0x18] sm:$0xff]  ;;  %v457_v5 = vld [vmem:[%s3136_s2] sm:$0xff] }
   0x2   :  { %v586_v2 = vld [vmem:[%s3136_s2 + $0x408] sm:$0xff]  ;;  %v698_v3 = vpack.c.bf16 %v460_v1, %v458_v0  ;;  %v588_v4 = vld [vmem:[%s3136_s2 + $0x418] sm:$0xff]  ;;  %v459_v6 = vld [vmem:[%s3136_s2 + $0x10] sm:$0xff] }
   0x3   :  { %v762_v7 = vpack.c.bf16 %v588_v4, %v586_v2  ;;  %v697_v8 = vpack.c.bf16 %v459_v6, %v457_v5  ;;  %v585_v9 = vld [vmem:[%s3136_s2 + $0x400] sm:$0xff]  ;;  %v587_v10 = vld [vmem:[%s3136_s2 + $0x410] sm:$0xff]  ;;  %v462_v11 = vld [vmem:[%s3136_s2 + $0x28] sm:$0xff] }
   0x4   :  { %848 = vmatprep.subr.bf16.mxu1 %v698_v3  ;;  %v761_v12 = vpack.c.bf16 %v587_v10, %v585_v9  ;;  %v464_v13 = vld [vmem:[%s3136_s2 + $0x38] sm:$0xff]  ;;  %v590_v14 = vld [vmem:[%s3136_s2 + $0x428] sm:$0xff]  ;;  %v461_v18 = vld [vmem:[%s3136_s2 + $0x20] sm:$0xff] }
   0x5   :  { %v592_v15 = vld [vmem:[%s3136_s2 + $0x438] sm:$0xff]  ;;  %1114 = vmatprep.subr.bf16.mxu0 %v762_v7  ;;  %849 = vmatpush1.bf16.msra.mxu1 %v697_v8  ;;  %v700_v16 = vpack.c.bf16 %v464_v13, %v462_v11  ;;  %v463_v19 = vld [vmem:[%s3136_s2 + $0x30] sm:$0xff]  ;;  %v589_v20 = vld [vmem:[%s3136_s2 + $0x420] sm:$0xff] }
   0x6   :  { %v764_v17 = vpack.c.bf16 %v592_v15, %v590_v14  ;;  %1115 = vmatpush1.bf16.msra.mxu0 %v761_v12  ;;  %v699_v21 = vpack.c.bf16 %v463_v19, %v461_v18  ;;  %v591_v22 = vld [vmem:[%s3136_s2 + $0x430] sm:$0xff]  ;;  %v466_v23 = vld [vmem:[%s3136_s2 + $0x48] sm:$0xff]  ;;  %v468_v24 = vld [vmem:[%s3136_s2 + $0x58] sm:$0xff] }
   0x7   :  { %850 = vmatprep.subr.bf16.mxu1 %v700_v16  ;;  %v763_v25 = vpack.c.bf16 %v591_v22, %v589_v20  ;;  %v702_v26 = vpack.c.bf16 %v468_v24, %v466_v23  ;;  %v594_v27 = vld [vmem:[%s3136_s2 + $0x448] sm:$0xff]  ;;  %v596_v28 = vld [vmem:[%s3136_s2 + $0x458] sm:$0xff]  ;;  %v465_v29 = vld [vmem:[%s3136_s2 + $0x40] sm:$0xff] }
   0x8   :  { %1116 = vmatprep.subr.bf16.mxu0 %v764_v17  ;;  %v766_v30 = vpack.c.bf16 %v596_v28, %v594_v27  ;;  %v467_v31 = vld [vmem:[%s3136_s2 + $0x50] sm:$0xff]  ;;  %v593_v32 = vld [vmem:[%s3136_s2 + $0x440] sm:$0xff]  ;;  %v470_v35 = vld [vmem:[%s3136_s2 + $0x68] sm:$0xff] }
   0x9   :  { %v595_v33 = vld [vmem:[%s3136_s2 + $0x450] sm:$0xff]  ;;  %851 = vmatpush1.bf16.msra.mxu1 %v699_v21  ;;  %v701_v34 = vpack.c.bf16 %v467_v31, %v465_v29  ;;  %v472_v36 = vld [vmem:[%s3136_s2 + $0x78] sm:$0xff]  ;;  %v598_v37 = vld [vmem:[%s3136_s2 + $0x468] sm:$0xff] }
   0xa   :  { %1117 = vmatpush1.bf16.msra.mxu0 %v763_v25  ;;  %852 = vmatprep.subr.bf16.mxu1 %v702_v26  ;;  %v765_v38 = vpack.c.bf16 %v595_v33, %v593_v32  ;;  %v704_v39 = vpack.c.bf16 %v472_v36, %v470_v35  ;;  %v600_v40 = vld [vmem:[%s3136_s2 + $0x478] sm:$0xff]  ;;  %v469_v41 = vld [vmem:[%s3136_s2 + $0x60] sm:$0xff]  ;;  %v471_v42 = vld [vmem:[%s3136_s2 + $0x70] sm:$0xff] }
   0xb   :  { %1118 = vmatprep.subr.bf16.mxu0 %v766_v30  ;;  %v768_v43 = vpack.c.bf16 %v600_v40, %v598_v37  ;;  %v597_v44 = vld [vmem:[%s3136_s2 + $0x460] sm:$0xff]  ;;  %v599_v45 = vld [vmem:[%s3136_s2 + $0x470] sm:$0xff]  ;;  %v474_v46 = vld [vmem:[%s3136_s2 + $0x88] sm:$0xff]  ;;  %v703_v50 = vpack.c.bf16 %v471_v42, %v469_v41 }
   0xc   :  { %v476_v47 = vld [vmem:[%s3136_s2 + $0x98] sm:$0xff]  ;;  %v602_v48 = vld [vmem:[%s3136_s2 + $0x488] sm:$0xff]  ;;  %v767_v51 = vpack.c.bf16 %v599_v45, %v597_v44  ;;  %v473_v53 = vld [vmem:[%s3136_s2 + $0x80] sm:$0xff] }
   0xd   :  { %v604_v49 = vld [vmem:[%s3136_s2 + $0x498] sm:$0xff]  ;;  %853 = vmatpush1.bf16.msra.mxu1 %v701_v34  ;;  %v706_v52 = vpack.c.bf16 %v476_v47, %v474_v46  ;;  %v475_v54 = vld [vmem:[%s3136_s2 + $0x90] sm:$0xff]  ;;  %v601_v55 = vld [vmem:[%s3136_s2 + $0x480] sm:$0xff]  ;;  %v177_v47 = vlaneseq }
   0xe   :  { %1119 = vmatpush1.bf16.msra.mxu0 %v765_v38  ;;  %854 = vmatprep.subr.bf16.mxu1 %v704_v39  ;;  %v770_v56 = vpack.c.bf16 %v604_v49, %v602_v48  ;;  %v603_v57 = vld [vmem:[%s3136_s2 + $0x490] sm:$0xff]  ;;  %v478_v58 = vld [vmem:[%s3136_s2 + $0xa8] sm:$0xff]  ;;  %v480_v59 = vld [vmem:[%s3136_s2 + $0xb8] sm:$0xff]  ;;  %v705_v62 = vpack.c.bf16 %v475_v54, %v473_v53 }
   0xf   :  { %1120 = vmatprep.subr.bf16.mxu0 %v768_v43  ;;  %v606_v60 = vld [vmem:[%s3136_s2 + $0x4a8] sm:$0xff]  ;;  %v608_v61 = vld [vmem:[%s3136_s2 + $0x4b8] sm:$0xff]  ;;  %v769_v63 = vpack.c.bf16 %v603_v57, %v601_v55  ;;  %v708_v0 = vpack.c.bf16 %v480_v59, %v478_v58  ;;  %v477_v1 = vld [vmem:[%s3136_s2 + $0xa0] sm:$0xff] }
  0x10   :  { %v479_v2 = vld [vmem:[%s3136_s2 + $0xb0] sm:$0xff]  ;;  %v605_v3 = vld [vmem:[%s3136_s2 + $0x4a0] sm:$0xff]  ;;  %v772_v4 = vpack.c.bf16 %v608_v61, %v606_v60  ;;  %v482_v6 = vld [vmem:[%s3136_s2 + $0xc8] sm:$0xff]  ;;  %v1830_v61 = vshrl.u32 %v177_v47, 7 }
  0x11   :  { %855 = vmatpush1.bf16.msra.mxu1 %v703_v50  ;;  %v607_v5 = vld [vmem:[%s3136_s2 + $0x4b0] sm:$0xff]  ;;  %v484_v7 = vld [vmem:[%s3136_s2 + $0xd8] sm:$0xff]  ;;  %v610_v8 = vld [vmem:[%s3136_s2 + $0x4c8] sm:$0xff]  ;;  %v707_v10 = vpack.c.bf16 %v479_v2, %v477_v1 }
  0x12   :  { %1121 = vmatpush1.bf16.msra.mxu0 %v767_v51  ;;  %856 = vmatprep.subr.bf16.mxu1 %v706_v52  ;;  %v612_v9 = vld [vmem:[%s3136_s2 + $0x4d8] sm:$0xff]  ;;  %v771_v11 = vpack.c.bf16 %v607_v5, %v605_v3  ;;  %v710_v12 = vpack.c.bf16 %v484_v7, %v482_v6  ;;  %v481_v13 = vld [vmem:[%s3136_s2 + $0xc0] sm:$0xff]  ;;  %v483_v14 = vld [vmem:[%s3136_s2 + $0xd0] sm:$0xff] }
  0x13   :  { %1122 = vmatprep.subr.bf16.mxu0 %v770_v56  ;;  %v609_v15 = vld [vmem:[%s3136_s2 + $0x4c0] sm:$0xff]  ;;  %v774_v16 = vpack.c.bf16 %v612_v9, %v610_v8  ;;  %v611_v17 = vld [vmem:[%s3136_s2 + $0x4d0] sm:$0xff]  ;;  %v486_v18 = vld [vmem:[%s3136_s2 + $0xe8] sm:$0xff]  ;;  %v709_v22 = vpack.c.bf16 %v483_v14, %v481_v13  ;;  %v183_v14 = vsub.s32 1, %v1830_v61 }
  0x14   :  { %v488_v19 = vld [vmem:[%s3136_s2 + $0xf8] sm:$0xff]  ;;  %v614_v20 = vld [vmem:[%s3136_s2 + $0x4e8] sm:$0xff]  ;;  %v773_v23 = vpack.c.bf16 %v611_v17, %v609_v15  ;;  %v485_v25 = vld [vmem:[%s3136_s2 + $0xe0] sm:$0xff]  ;;  %v199_v15 = vsub.s32 5, %v1830_v61 }
  0x15   :  { %857 = vmatpush1.bf16.msra.mxu1 %v705_v62  ;;  %v616_v21 = vld [vmem:[%s3136_s2 + $0x4f8] sm:$0xff]  ;;  %v712_v24 = vpack.c.bf16 %v488_v19, %v486_v18  ;;  %v487_v26 = vld [vmem:[%s3136_s2 + $0xf0] sm:$0xff]  ;;  %v613_v27 = vld [vmem:[%s3136_s2 + $0x4e0] sm:$0xff] }
  0x16   :  { %1123 = vmatpush1.bf16.msra.mxu0 %v769_v63  ;;  %858 = vmatprep.subr.bf16.mxu1 %v708_v0  ;;  %v776_v28 = vpack.c.bf16 %v616_v21, %v614_v20  ;;  %v615_v29 = vld [vmem:[%s3136_s2 + $0x4f0] sm:$0xff]  ;;  %v490_v30 = vld [vmem:[%s3136_s2 + $0x108] sm:$0xff]  ;;  %v492_v31 = vld [vmem:[%s3136_s2 + $0x118] sm:$0xff]  ;;  %v711_v34 = vpack.c.bf16 %v487_v26, %v485_v25 }
  0x17   :  { %1124 = vmatprep.subr.bf16.mxu0 %v772_v4  ;;  %v618_v32 = vld [vmem:[%s3136_s2 + $0x508] sm:$0xff]  ;;  %v620_v33 = vld [vmem:[%s3136_s2 + $0x518] sm:$0xff]  ;;  %v775_v35 = vpack.c.bf16 %v615_v29, %v613_v27  ;;  %v714_v36 = vpack.c.bf16 %v492_v31, %v490_v30  ;;  %v489_v37 = vld [vmem:[%s3136_s2 + $0x100] sm:$0xff] }
  0x18   :  { %v491_v38 = vld [vmem:[%s3136_s2 + $0x110] sm:$0xff]  ;;  %v617_v39 = vld [vmem:[%s3136_s2 + $0x500] sm:$0xff]  ;;  %v778_v40 = vpack.c.bf16 %v620_v33, %v618_v32  ;;  %v494_v42 = vld [vmem:[%s3136_s2 + $0x128] sm:$0xff] }
  0x19   :  { %859 = vmatpush1.bf16.msra.mxu1 %v707_v10  ;;  %v619_v41 = vld [vmem:[%s3136_s2 + $0x510] sm:$0xff]  ;;  %v496_v43 = vld [vmem:[%s3136_s2 + $0x138] sm:$0xff]  ;;  %v622_v44 = vld [vmem:[%s3136_s2 + $0x528] sm:$0xff]  ;;  %v713_v46 = vpack.c.bf16 %v491_v38, %v489_v37 }
  0x1a   :  { %1125 = vmatpush1.bf16.msra.mxu0 %v771_v11  ;;  %860 = vmatprep.subr.bf16.mxu1 %v710_v12  ;;  %v624_v45 = vld [vmem:[%s3136_s2 + $0x538] sm:$0xff]  ;;  %v777_v48 = vpack.c.bf16 %v619_v41, %v617_v39  ;;  %v716_v49 = vpack.c.bf16 %v496_v43, %v494_v42  ;;  %v493_v50 = vld [vmem:[%s3136_s2 + $0x120] sm:$0xff]  ;;  %v495_v51 = vld [vmem:[%s3136_s2 + $0x130] sm:$0xff] }
  0x1b   :  { %1126 = vmatprep.subr.bf16.mxu0 %v774_v16  ;;  %v621_v52 = vld [vmem:[%s3136_s2 + $0x520] sm:$0xff]  ;;  %v780_v53 = vpack.c.bf16 %v624_v45, %v622_v44  ;;  %v623_v54 = vld [vmem:[%s3136_s2 + $0x530] sm:$0xff]  ;;  %v498_v55 = vld [vmem:[%s3136_s2 + $0x148] sm:$0xff]  ;;  %v715_v59 = vpack.c.bf16 %v495_v51, %v493_v50  ;;  %v191_v16 = vsub.s32 3, %v1830_v61 }
  0x1c   :  { %v500_v56 = vld [vmem:[%s3136_s2 + $0x158] sm:$0xff]  ;;  %v626_v57 = vld [vmem:[%s3136_s2 + $0x548] sm:$0xff]  ;;  %v497_v60 = vld [vmem:[%s3136_s2 + $0x140] sm:$0xff]  ;;  %v779_v62 = vpack.c.bf16 %v623_v54, %v621_v52  ;;  %v203_v54 = vsub.s32 6, %v1830_v61 }
  0x1d   :  { %861 = vmatpush1.bf16.msra.mxu1 %v709_v22  ;;  %v628_v58 = vld [vmem:[%s3136_s2 + $0x558] sm:$0xff]  ;;  %v718_v63 = vpack.c.bf16 %v500_v56, %v498_v55  ;;  %v499_v0 = vld [vmem:[%s3136_s2 + $0x150] sm:$0xff]  ;;  %v625_v1 = vld [vmem:[%s3136_s2 + $0x540] sm:$0xff]  ;;  %v207_v22 = vsub.s32 7, %v1830_v61 }
  0x1e   :  { %1127 = vmatpush1.bf16.msra.mxu0 %v773_v23  ;;  %862 = vmatprep.subr.bf16.mxu1 %v712_v24  ;;  %v627_v2 = vld [vmem:[%s3136_s2 + $0x550] sm:$0xff]  ;;  %v782_v3 = vpack.c.bf16 %v628_v58, %v626_v57  ;;  %v502_v4 = vld [vmem:[%s3136_s2 + $0x168] sm:$0xff]  ;;  %v504_v5 = vld [vmem:[%s3136_s2 + $0x178] sm:$0xff]  ;;  %v717_v10 = vpack.c.bf16 %v499_v0, %v497_v60  ;;  %v187_v23 = vsub.s32 2, %v1830_v61 }
  0x1f   :  { %1128 = vmatprep.subr.bf16.mxu0 %v776_v28  ;;  %v630_v6 = vld [vmem:[%s3136_s2 + $0x568] sm:$0xff]  ;;  %v632_v7 = vld [vmem:[%s3136_s2 + $0x578] sm:$0xff]  ;;  %v501_v8 = vld [vmem:[%s3136_s2 + $0x160] sm:$0xff]  ;;  %v781_v17 = vpack.c.bf16 %v627_v2, %v625_v1  ;;  %v720_v18 = vpack.c.bf16 %v504_v5, %v502_v4 }
  0x20   :  { %v503_v9 = vld [vmem:[%s3136_s2 + $0x170] sm:$0xff]  ;;  %v629_v11 = vld [vmem:[%s3136_s2 + $0x560] sm:$0xff]  ;;  %v506_v13 = vld [vmem:[%s3136_s2 + $0x188] sm:$0xff]  ;;  %v784_v24 = vpack.c.bf16 %v632_v7, %v630_v6  ;;  %v195_v6 = vsub.s32 4, %v1830_v61 }
  0x21   :  { %863 = vmatpush1.bf16.msra.mxu1 %v711_v34  ;;  %v631_v12 = vld [vmem:[%s3136_s2 + $0x570] sm:$0xff]  ;;  %v508_v19 = vld [vmem:[%s3136_s2 + $0x198] sm:$0xff]  ;;  %v634_v20 = vld [vmem:[%s3136_s2 + $0x588] sm:$0xff]  ;;  %v719_v26 = vpack.c.bf16 %v503_v9, %v501_v8 }
  0x22   :  { %1129 = vmatpush1.bf16.msra.mxu0 %v775_v35  ;;  %864 = vmatprep.subr.bf16.mxu1 %v714_v36  ;;  %v636_v21 = vld [vmem:[%s3136_s2 + $0x598] sm:$0xff]  ;;  %v16_v25 = vld [vmem:[%s3137_s0 + $0x8] sm:$0xff]  ;;  %v783_v27 = vpack.c.bf16 %v631_v12, %v629_v11  ;;  %v1891_v29 = vld [vmem:[%s3138_s1] sm:$0xff]  ;;  %v722_v31 = vpack.c.bf16 %v508_v19, %v506_v13 }
  0x23   :  { %1130 = vmatprep.subr.bf16.mxu0 %v778_v40  ;;  %v24_v28 = vld [vmem:[%s3137_s0 + $0x48] sm:$0xff]  ;;  %v786_v32 = vpack.c.bf16 %v636_v21, %v634_v20  ;;  %v1897_v33 = vrot.slane %v1891_v29, %v183_v14  ;;  %v1903_v35 = vrot.slane %v1891_v29, %v199_v15  ;;  %v505_v36 = vld [vmem:[%s3136_s2 + $0x180] sm:$0xff]  ;;  %v507_v37 = vld [vmem:[%s3136_s2 + $0x190] sm:$0xff]  ;;  %v1915_v39 = vrot.slane %v1891_v29, %v191_v16 }
  0x24   :  { %v20_v30 = vld [vmem:[%s3137_s0 + $0x28] sm:$0xff]  ;;  %v633_v38 = vld [vmem:[%s3136_s2 + $0x580] sm:$0xff]  ;;  %v1918_v40 = vrot.slane %v1891_v29, %v207_v22  ;;  %v1921_v41 = vrot.slane %v1891_v29, %v187_v23  ;;  %v635_v42 = vld [vmem:[%s3136_s2 + $0x590] sm:$0xff]  ;;  %v721_v51 = vpack.c.bf16 %v507_v37, %v505_v36  ;;  %v1973_v7 = vrot.slane %v1891_v29, %v203_v54 }
  0x25   :  { %865 = vmatpush1.bf16.msra.mxu1 %v713_v46  ;;  %v28_v34 = vld [vmem:[%s3137_s0 + $0x68] sm:$0xff]  ;;  %v512_v44 = vld [vmem:[%s3136_s2 + $0x1b8] sm:$0xff]  ;;  %v218_v45 = vmul.f32 %v1897_v33, %v16_v25  ;;  %v226_v46 = vmul.f32 %v1897_v33, %v24_v28  ;;  %v222_v47 = vmul.f32 %v1903_v35, %v20_v30  ;;  %v785_v55 = vpack.c.bf16 %v635_v42, %v633_v38  ;;  %v509_v57 = vld [vmem:[%s3136_s2 + $0x1a0] sm:$0xff] }
  0x26   :  { %1131 = vmatpush1.bf16.msra.mxu0 %v777_v48  ;;  %866 = vmatprep.subr.bf16.mxu1 %v716_v49  ;;  %v510_v43 = vld [vmem:[%s3136_s2 + $0x1a8] sm:$0xff]  ;;  %v230_v48 = vmul.f32 %v1903_v35, %v28_v34  ;;  %v640_v50 = vld [vmem:[%s3136_s2 + $0x5b8] sm:$0xff]  ;;  %v511_v58 = vld [vmem:[%s3136_s2 + $0x1b0] sm:$0xff] }
  0x27   :  { %1132 = vmatprep.subr.bf16.mxu0 %v780_v53  ;;  %v638_v49 = vld [vmem:[%s3136_s2 + $0x5a8] sm:$0xff]  ;;  %v378_v52 = vpack.c.bf16 %v226_v46, %v218_v45  ;;  %v724_v56 = vpack.c.bf16 %v512_v44, %v510_v43  ;;  %v516_v0 = vld [vmem:[%s3136_s2 + $0x1d8] sm:$0xff]  ;;  %v723_v4 = vpack.c.bf16 %v511_v58, %v509_v57  ;;  %v513_v5 = vld [vmem:[%s3136_s2 + $0x1c0] sm:$0xff] }
  0x28   :  { %v382_v53 = vpack.c.bf16 %v230_v48, %v222_v47  ;;  %v788_v60 = vpack.c.bf16 %v640_v50, %v638_v49  ;;  %v642_v1 = vld [vmem:[%s3136_s2 + $0x5c8] sm:$0xff]  ;;  %v644_v2 = vld [vmem:[%s3136_s2 + $0x5d8] sm:$0xff]  ;;  %v641_v11 = vld [vmem:[%s3136_s2 + $0x5c0] sm:$0xff] }
  0x29   :  { %867 = vmatpush1.bf16.msra.mxu1 %v715_v59  ;;  %v637_v59 = vld [vmem:[%s3136_s2 + $0x5a0] sm:$0xff]  ;;  %880 = vmatprep.mubr.bf16.mxu1 %v378_v52  ;;  %v643_v12 = vld [vmem:[%s3136_s2 + $0x5d0] sm:$0xff]  ;;  %v518_v13 = vld [vmem:[%s3136_s2 + $0x1e8] sm:$0xff] }
  0x2a   :  { %1133 = vmatpush1.bf16.msra.mxu0 %v779_v62  ;;  %868 = vmatprep.subr.bf16.mxu1 %v718_v63  ;;  %v639_v62 = vld [vmem:[%s3136_s2 + $0x5b0] sm:$0xff]  ;;  %v514_v63 = vld [vmem:[%s3136_s2 + $0x1c8] sm:$0xff]  ;;  %v520_v14 = vld [vmem:[%s3136_s2 + $0x1f8] sm:$0xff] }
  0x2b   :  { %1134 = vmatprep.subr.bf16.mxu0 %v782_v3  ;;  %1146 = vmatprep.mubr.bf16.mxu0 %v382_v53  ;;  %v179_v3 = vsub.s32 0, %v1830_v61  ;;  %v787_v8 = vpack.c.bf16 %v639_v62, %v637_v59  ;;  %v726_v9 = vpack.c.bf16 %v516_v0, %v514_v63  ;;  %v790_v61 = vpack.c.bf16 %v644_v2, %v642_v1  ;;  %v646_v15 = vld [vmem:[%s3136_s2 + $0x5e8] sm:$0xff]  ;;  %v648_v16 = vld [vmem:[%s3136_s2 + $0x5f8] sm:$0xff]  ;;  %v645_v21 = vld [vmem:[%s3136_s2 + $0x5e0] sm:$0xff] }
  0x2c   :  { %v647_v22 = vld [vmem:[%s3136_s2 + $0x5f0] sm:$0xff]  ;;  %v15_v23 = vld [vmem:[%s3137_s0] sm:$0xff]  ;;  %v522_v25 = vld [vmem:[%s3136_s2 + $0x208] sm:$0xff]  ;;  %v728_v28 = vpack.c.bf16 %v520_v14, %v518_v13  ;;  %v792_v34 = vpack.c.bf16 %v648_v16, %v646_v15 }
  0x2d   :  { %869 = vmatpush1.bf16.msra.mxu1 %v717_v10  ;;  %v515_v10 = vld [vmem:[%s3136_s2 + $0x1d0] sm:$0xff]  ;;  %v2003_v19 = vrot.slane %v1891_v29, %v179_v3  ;;  %v524_v30 = vld [vmem:[%s3136_s2 + $0x218] sm:$0xff]  ;;  %v32_v37 = vld [vmem:[%s3137_s0 + $0x88] sm:$0xff]  ;;  %v791_v52 = vpack.c.bf16 %v647_v22, %v645_v21 }
  0x2e   :  { %1135 = vmatpush1.bf16.msra.mxu0 %v781_v17  ;;  %870 = vmatprep.subr.bf16.mxu1 %v720_v18  ;;  %v517_v17 = vld [vmem:[%s3136_s2 + $0x1e0] sm:$0xff]  ;;  %v519_v18 = vld [vmem:[%s3136_s2 + $0x1f0] sm:$0xff]  ;;  %v725_v20 = vpack.c.bf16 %v515_v10, %v513_v5  ;;  %v652_v36 = vld [vmem:[%s3136_s2 + $0x618] sm:$0xff]  ;;  %v730_v53 = vpack.c.bf16 %v524_v30, %v522_v25 }
  0x2f   :  { %1136 = vmatprep.subr.bf16.mxu0 %v784_v24  ;;  %v23_v24 = vld [vmem:[%s3137_s0 + $0x40] sm:$0xff]  ;;  %v217_v38 = vmul.f32 %v2003_v19, %v15_v23  ;;  %v40_v43 = vld [vmem:[%s3137_s0 + $0xc8] sm:$0xff]  ;;  %v727_v46 = vpack.c.bf16 %v519_v18, %v517_v17  ;;  %v523_v50 = vld [vmem:[%s3136_s2 + $0x210] sm:$0xff] }
  0x30   :  { %v225_v42 = vmul.f32 %v2003_v19, %v23_v24  ;;  %v36_v44 = vld [vmem:[%s3137_s0 + $0xa8] sm:$0xff]  ;;  %v521_v49 = vld [vmem:[%s3136_s2 + $0x200] sm:$0xff]  ;;  %v528_v57 = vld [vmem:[%s3136_s2 + $0x238] sm:$0xff]  ;;  %v242_v62 = vmul.f32 %v1897_v33, %v40_v43 }
  0x31   :  { %871 = vmatpush1.bf16.msra.mxu1 %v719_v26  ;;  %v2021_v26 = vrot.slane %v1891_v29, %v195_v6  ;;  %v650_v29 = vld [vmem:[%s3136_s2 + $0x608] sm:$0xff]  ;;  %v2075_v58 = vld [vmem:[%s3136_s2 + $0x220] sm:$0xff]  ;;  %v2080_v59 = vld [vmem:[%s3136_s2 + $0x230] sm:$0xff]  ;;  %v238_v63 = vmul.f32 %v1903_v35, %v36_v44 }
  0x32   :  { %1137 = vmatpush1.bf16.msra.mxu0 %v783_v27  ;;  %872 = vmatprep.subr.bf16.mxu1 %v722_v31  ;;  %v789_v27 = vpack.c.bf16 %v643_v12, %v641_v11  ;;  %v19_v31 = vld [vmem:[%s3137_s0 + $0x20] sm:$0xff]  ;;  %v44_v45 = vld [vmem:[%s3137_s0 + $0xe8] sm:$0xff]  ;;  %v794_v54 = vpack.c.bf16 %v652_v36, %v650_v29  ;;  %v377_v2 = vpack.c.bf16 %v225_v42, %v217_v38  ;;  %v656_v3 = vld [vmem:[%s3136_s2 + $0x638] sm:$0xff] }
  0x33   :  { %1138 = vmatprep.subr.bf16.mxu0 %v786_v32  ;;  %v27_v32 = vld [vmem:[%s3137_s0 + $0x60] sm:$0xff]  ;;  %v221_v47 = vmul.f32 %v2021_v26, %v19_v31  ;;  %v246_v0 = vmul.f32 %v1903_v35, %v44_v45  ;;  %v654_v1 = vld [vmem:[%s3136_s2 + $0x628] sm:$0xff]  ;;  %v655_v13 = vld [vmem:[%s3136_s2 + $0x630] sm:$0xff]  ;;  %v731_v22 = vpack.c.bf16 %v2080_v59, %v2075_v58 }
  0x34   :  { %v229_v48 = vmul.f32 %v2021_v26, %v27_v32  ;;  %v39_v5 = vld [vmem:[%s3137_s0 + $0xc0] sm:$0xff]  ;;  %v530_v14 = vld [vmem:[%s3136_s2 + $0x248] sm:$0xff]  ;;  %v532_v15 = vld [vmem:[%s3136_s2 + $0x258] sm:$0xff]  ;;  %v796_v23 = vpack.c.bf16 %v656_v3, %v654_v1 }
  0x35   :  { %873 = vmatpush1.bf16.msra.mxu1 %v721_v51  ;;  %v649_v51 = vld [vmem:[%s3136_s2 + $0x600] sm:$0xff]  ;;  %v390_v17 = vpack.c.bf16 %v246_v0, %v238_v63  ;;  %v658_v18 = vld [vmem:[%s3136_s2 + $0x648] sm:$0xff]  ;;  %v241_v25 = vmul.f32 %v2003_v19, %v39_v5  ;;  %v531_v36 = vld [vmem:[%s3136_s2 + $0x250] sm:$0xff] }
  0x36   :  { %1139 = vmatpush1.bf16.msra.mxu0 %v785_v55  ;;  %874 = vmatprep.subr.bf16.mxu1 %v724_v56  ;;  %v651_v55 = vld [vmem:[%s3136_s2 + $0x610] sm:$0xff]  ;;  %v526_v56 = vld [vmem:[%s3136_s2 + $0x228] sm:$0xff]  ;;  %v381_v6 = vpack.c.bf16 %v229_v48, %v221_v47  ;;  %v43_v10 = vld [vmem:[%s3137_s0 + $0xe0] sm:$0xff] }
  0x37   :  { %1140 = vmatprep.subr.bf16.mxu0 %v788_v60  ;;  %v234_v60 = vmul.f32 %v1897_v33, %v32_v37  ;;  %v653_v11 = vld [vmem:[%s3136_s2 + $0x620] sm:$0xff]  ;;  %v793_v12 = vpack.c.bf16 %v651_v55, %v649_v51  ;;  %v56_v21 = vld [vmem:[%s3137_s0 + $0x148] sm:$0xff]  ;;  %v245_v32 = vmul.f32 %v2021_v26, %v43_v10  ;;  %v734_v37 = vpack.c.bf16 %v532_v15, %v530_v14  ;;  %v536_v44 = vld [vmem:[%s3136_s2 + $0x278] sm:$0xff] }
  0x38   :  { %v60_v30 = vld [vmem:[%s3137_s0 + $0x168] sm:$0xff]  ;;  %v529_v29 = vld [vmem:[%s3136_s2 + $0x240] sm:$0xff]  ;;  %v258_v42 = vmul.f32 %v1897_v33, %v56_v21  ;;  %v540_v1 = vld [vmem:[%s3136_s2 + $0x298] sm:$0xff] }
  0x39   :  { %875 = vmatpush1.bf16.msra.mxu1 %v723_v4  ;;  %v31_v4 = vld [vmem:[%s3137_s0 + $0x80] sm:$0xff]  ;;  %v386_v16 = vpack.c.bf16 %v242_v62, %v234_v60  ;;  %v534_v43 = vld [vmem:[%s3136_s2 + $0x268] sm:$0xff]  ;;  %v262_v48 = vmul.f32 %v1903_v35, %v60_v30  ;;  %v664_v60 = vld [vmem:[%s3136_s2 + $0x678] sm:$0xff] }
  0x3a   :  { %1141 = vmatpush1.bf16.msra.mxu0 %v787_v8  ;;  %876 = vmatprep.subr.bf16.mxu1 %v726_v9  ;;  %v729_v8 = vpack.c.bf16 %v523_v50, %v521_v49  ;;  %v35_v9 = vld [vmem:[%s3137_s0 + $0xa0] sm:$0xff]  ;;  %v233_v24 = vmul.f32 %v2003_v19, %v31_v4  ;;  %v659_v49 = vld [vmem:[%s3136_s2 + $0x650] sm:$0xff]  ;;  %v662_v59 = vld [vmem:[%s3136_s2 + $0x668] sm:$0xff]  ;;  %v736_v63 = vpack.c.bf16 %v536_v44, %v534_v43 }
  0x3b   :  { %1142 = vmatprep.subr.bf16.mxu0 %v790_v61  ;;  %v732_v61 = vpack.c.bf16 %v528_v57, %v526_v56  ;;  %v237_v31 = vmul.f32 %v2021_v26, %v35_v9  ;;  %v657_v45 = vld [vmem:[%s3136_s2 + $0x640] sm:$0xff]  ;;  %v733_v57 = vpack.c.bf16 %v531_v36, %v529_v29  ;;  %v538_v0 = vld [vmem:[%s3136_s2 + $0x288] sm:$0xff]  ;;  %v663_v14 = vld [vmem:[%s3136_s2 + $0x670] sm:$0xff] }
  0x3c   :  { %v47_v50 = vld [vmem:[%s3137_s0 + $0x100] sm:$0xff]  ;;  %v797_v4 = vpack.c.bf16 %v659_v49, %v657_v45  ;;  %v76_v9 = vld [vmem:[%s3137_s0 + $0x1e8] sm:$0xff]  ;;  %v668_v21 = vld [vmem:[%s3136_s2 + $0x698] sm:$0xff] }
  0x3d   :  { %877 = vmatpush1.bf16.msra.mxu1 %v725_v20  ;;  %v48_v20 = vld [vmem:[%s3137_s0 + $0x108] sm:$0xff]  ;;  %v55_v51 = vld [vmem:[%s3137_s0 + $0x140] sm:$0xff]  ;;  %v389_v56 = vpack.c.bf16 %v245_v32, %v237_v31  ;;  %v249_v5 = vmul.f32 %v2003_v19, %v47_v50  ;;  %v544_v29 = vld [vmem:[%s3136_s2 + $0x2b8] sm:$0xff] }
  0x3e   :  { %1143 = vmatpush1.bf16.msra.mxu0 %v789_v27  ;;  %878 = vmatprep.subr.bf16.mxu1 %v728_v28  ;;  %v660_v27 = vld [vmem:[%s3136_s2 + $0x658] sm:$0xff]  ;;  %v52_v28 = vld [vmem:[%s3137_s0 + $0x128] sm:$0xff]  ;;  %v250_v38 = vmul.f32 %v1897_v33, %v48_v20  ;;  %v51_v55 = vld [vmem:[%s3137_s0 + $0x120] sm:$0xff]  ;;  %v257_v10 = vmul.f32 %v2003_v19, %v55_v51 }
  0x3f   :  { %1144 = vmatprep.subr.bf16.mxu0 %v792_v34  ;;  %v795_v34 = vpack.c.bf16 %v655_v13, %v653_v11  ;;  %v254_v47 = vmul.f32 %v1903_v35, %v52_v28  ;;  %v59_v58 = vld [vmem:[%s3137_s0 + $0x160] sm:$0xff]  ;;  %v666_v20 = vld [vmem:[%s3136_s2 + $0x688] sm:$0xff]  ;;  %v667_v43 = vld [vmem:[%s3136_s2 + $0x690] sm:$0xff] }
  0x40   :  { %v394_v62 = vpack.c.bf16 %v258_v42, %v250_v38  ;;  %v661_v13 = vld [vmem:[%s3136_s2 + $0x660] sm:$0xff]  ;;  %v261_v15 = vmul.f32 %v2021_v26, %v59_v58  ;;  %v393_v36 = vpack.c.bf16 %v257_v10, %v249_v5  ;;  %v802_v38 = vpack.c.bf16 %v668_v21, %v666_v20  ;;  %v546_v51 = vld [vmem:[%s3136_s2 + $0x2c8] sm:$0xff]  ;;  %v548_v58 = vld [vmem:[%s3136_s2 + $0x2d8] sm:$0xff] }
  0x41   :  { %879 = vmatpush1.bf16.msra.mxu1 %v727_v46  ;;  %v798_v46 = vpack.c.bf16 %v660_v27, %v658_v18  ;;  %v398_v3 = vpack.c.bf16 %v262_v48, %v254_v47  ;;  %v63_v27 = vld [vmem:[%s3137_s0 + $0x180] sm:$0xff]  ;;  %v799_v30 = vpack.c.bf16 %v663_v14, %v661_v13  ;;  %v670_v47 = vld [vmem:[%s3136_s2 + $0x6a8] sm:$0xff]  ;;  %v672_v48 = vld [vmem:[%s3136_s2 + $0x6b8] sm:$0xff] }
  0x42   :  { %1145 = vmatpush1.bf16.msra.mxu0 %v791_v52  ;;  %981 = vmatprep.subr.bf16.mxu1 %v730_v53  ;;  %v385_v52 = vpack.c.bf16 %v241_v25, %v233_v24  ;;  %v533_v53 = vld [vmem:[%s3136_s2 + $0x260] sm:$0xff]  ;;  %v278_v25 = vmul.f32 %v1903_v35, %v76_v9  ;;  %v742_v9 = vpack.c.bf16 %v548_v58, %v546_v51  ;;  %v552_v21 = vld [vmem:[%s3136_s2 + $0x2f8] sm:$0xff] }
  0x43   :  { %1247 = vmatprep.subr.bf16.mxu0 %v794_v54  ;;  %v535_v54 = vld [vmem:[%s3136_s2 + $0x270] sm:$0xff]  ;;  %v71_v28 = vld [vmem:[%s3137_s0 + $0x1c0] sm:$0xff] }
  0x44   :  { %881 = vmatmul.mubr.bf16.vlgmr.msra.gmra.mrb[0].mxu1 %v377_v2  ;;  %v64_v2 = vld [vmem:[%s3137_s0 + $0x188] sm:$0xff]  ;;  %v735_v11 = vpack.c.bf16 %v535_v54, %v533_v53  ;;  %v67_v31 = vld [vmem:[%s3137_s0 + $0x1a0] sm:$0xff]  ;;  %v265_v54 = vmul.f32 %v2003_v19, %v63_v27 }
  0x45   :  { %1147 = vmatmul.mubr.bf16.vlgmr.msra.gmra.mrb[0].mxu0 %v381_v6  ;;  %982 = vmatpush1.bf16.msra.mxu1 %v729_v8  ;;  %v72_v6 = vld [vmem:[%s3137_s0 + $0x1c8] sm:$0xff]  ;;  %v266_v18 = vmul.f32 %v1897_v33, %v64_v2  ;;  %v75_v32 = vld [vmem:[%s3137_s0 + $0x1e0] sm:$0xff]  ;;  %v671_v2 = vld [vmem:[%s3136_s2 + $0x6b0] sm:$0xff] }
  0x46   :  { %1248 = vmatpush1.bf16.msra.mxu0 %v793_v12  ;;  %983 = vmatprep.subr.bf16.mxu1 %v732_v61  ;;  %v68_v8 = vld [vmem:[%s3137_s0 + $0x1a8] sm:$0xff]  ;;  %v253_v12 = vmul.f32 %v2021_v26, %v51_v55  ;;  %v800_v61 = vpack.c.bf16 %v664_v60, %v662_v59  ;;  %v665_v42 = vld [vmem:[%s3136_s2 + $0x680] sm:$0xff]  ;;  %v273_v55 = vmul.f32 %v2003_v19, %v71_v28 }
  0x47   :  { %890 = vmatprep.mubr.bf16.mxu1 %v386_v16  ;;  %1156 = vmatprep.mubr.bf16.mxu0 %v390_v17  ;;  %v738_v16 = vpack.c.bf16 %v540_v1, %v538_v0  ;;  %v537_v17 = vld [vmem:[%s3136_s2 + $0x280] sm:$0xff]  ;;  %v270_v24 = vmul.f32 %v1903_v35, %v68_v8  ;;  %v88_v53 = vld [vmem:[%s3137_s0 + $0x248] sm:$0xff]  ;;  %v804_v0 = vpack.c.bf16 %v672_v48, %v670_v47  ;;  %v676_v8 = vld [vmem:[%s3136_s2 + $0x6d8] sm:$0xff] }
  0x48   :  { %1249 = vmatprep.subr.bf16.mxu0 %v796_v23  ;;  %v274_v23 = vmul.f32 %v1897_v33, %v72_v6  ;;  %v397_v44 = vpack.c.bf16 %v261_v15, %v253_v12  ;;  %v84_v59 = vld [vmem:[%s3137_s0 + $0x228] sm:$0xff]  ;;  %v669_v1 = vld [vmem:[%s3136_s2 + $0x6a0] sm:$0xff]  ;;  %v290_v5 = vmul.f32 %v1897_v33, %v88_v53 }
  0x49   :  { %984 = vmatpush1.bf16.msra.mxu1 %v731_v22  ;;  %v539_v22 = vld [vmem:[%s3136_s2 + $0x290] sm:$0xff]  ;;  %v406_v50 = vpack.c.bf16 %v278_v25, %v270_v24  ;;  %v92_v60 = vld [vmem:[%s3137_s0 + $0x268] sm:$0xff]  ;;  %v545_v10 = vld [vmem:[%s3136_s2 + $0x2c0] sm:$0xff]  ;;  %v286_v12 = vmul.f32 %v1903_v35, %v84_v59 }
  0x4a   :  { %1250 = vmatpush1.bf16.msra.mxu0 %v795_v34  ;;  %985 = vmatprep.subr.bf16.mxu1 %v734_v37  ;;  %v542_v34 = vld [vmem:[%s3136_s2 + $0x2a8] sm:$0xff]  ;;  %v541_v37 = vld [vmem:[%s3136_s2 + $0x2a0] sm:$0xff]  ;;  %v737_v45 = vpack.c.bf16 %v539_v22, %v537_v17  ;;  %v402_v49 = vpack.c.bf16 %v274_v23, %v266_v18  ;;  %v803_v17 = vpack.c.bf16 %v671_v2, %v669_v1  ;;  %v675_v24 = vld [vmem:[%s3136_s2 + $0x6d0] sm:$0xff] }
  0x4b   :  { %1251 = vmatprep.subr.bf16.mxu0 %v798_v46  ;;  %v543_v46 = vld [vmem:[%s3136_s2 + $0x2b0] sm:$0xff]  ;;  %v674_v6 = vld [vmem:[%s3136_s2 + $0x6c8] sm:$0xff]  ;;  %v79_v13 = vld [vmem:[%s3137_s0 + $0x200] sm:$0xff]  ;;  %v401_v18 = vpack.c.bf16 %v273_v55, %v265_v54 }
  0x4c   :  { %891 = vmatmul.mubr.bf16.gmra.mrb[4].mxu1 %v385_v52  ;;  %v80_v52 = vld [vmem:[%s3137_s0 + $0x208] sm:$0xff]  ;;  %v87_v14 = vld [vmem:[%s3137_s0 + $0x240] sm:$0xff]  ;;  %v806_v22 = vpack.c.bf16 %v676_v8, %v674_v6 }
  0x4d   :  { %1157 = vmatmul.mubr.bf16.gmra.mrb[4].mxu0 %v389_v56  ;;  %986 = vmatpush1.bf16.msra.mxu1 %v733_v57  ;;  %v740_v56 = vpack.c.bf16 %v544_v29, %v542_v34  ;;  %v801_v57 = vpack.c.bf16 %v667_v43, %v665_v42  ;;  %v83_v15 = vld [vmem:[%s3137_s0 + $0x220] sm:$0xff]  ;;  %v551_v29 = vld [vmem:[%s3136_s2 + $0x2f0] sm:$0xff]  ;;  %v100_v43 = vld [vmem:[%s3137_s0 + $0x2a8] sm:$0xff]  ;;  %v289_v47 = vmul.f32 %v2003_v19, %v87_v14 }
  0x4e   :  { %900 = vmatprep.mubr.bf16.mxu1 %v394_v62  ;;  %987 = vmatprep.subr.bf16.mxu1 %v736_v63  ;;  %v269_v62 = vmul.f32 %v2021_v26, %v67_v31  ;;  %v277_v63 = vmul.f32 %v2021_v26, %v75_v32  ;;  %v91_v20 = vld [vmem:[%s3137_s0 + $0x260] sm:$0xff]  ;;  %v680_v31 = vld [vmem:[%s3136_s2 + $0x6f8] sm:$0xff]  ;;  %v285_v48 = vmul.f32 %v2021_v26, %v83_v15  ;;  %v686_v15 = vld [vmem:[%s3136_s2 + $0x728] sm:$0xff] }
  0x4f   :  { %1166 = vmatprep.mubr.bf16.mxu0 %v398_v3  ;;  %1252 = vmatpush1.bf16.msra.mxu0 %v797_v4  ;;  %v739_v3 = vpack.c.bf16 %v543_v46, %v541_v37  ;;  %v282_v4 = vmul.f32 %v1897_v33, %v80_v52  ;;  %v673_v23 = vld [vmem:[%s3136_s2 + $0x6c0] sm:$0xff]  ;;  %v104_v37 = vld [vmem:[%s3137_s0 + $0x2c8] sm:$0xff]  ;;  %v679_v52 = vld [vmem:[%s3136_s2 + $0x6f0] sm:$0xff]  ;;  %v293_v53 = vmul.f32 %v2021_v26, %v91_v20 }
  0x50   :  { %1253 = vmatprep.subr.bf16.mxu0 %v800_v61  ;;  %v294_v61 = vmul.f32 %v1903_v35, %v92_v60  ;;  %v405_v25 = vpack.c.bf16 %v277_v63, %v269_v62  ;;  %v549_v28 = vld [vmem:[%s3136_s2 + $0x2e0] sm:$0xff]  ;;  %v805_v46 = vpack.c.bf16 %v675_v24, %v673_v23  ;;  %v306_v55 = vmul.f32 %v1897_v33, %v104_v37  ;;  %v559_v20 = vld [vmem:[%s3136_s2 + $0x330] sm:$0xff] }
  0x51   :  { %988 = vmatpush1.bf16.msra.mxu1 %v735_v11  ;;  %v547_v11 = vld [vmem:[%s3136_s2 + $0x2d0] sm:$0xff]  ;;  %v410_v27 = vpack.c.bf16 %v290_v5, %v282_v4  ;;  %v677_v51 = vld [vmem:[%s3136_s2 + $0x6e0] sm:$0xff]  ;;  %v743_v58 = vpack.c.bf16 %v551_v29, %v549_v28  ;;  %v302_v59 = vmul.f32 %v1903_v35, %v100_v43  ;;  %v558_v4 = vld [vmem:[%s3136_s2 + $0x328] sm:$0xff] }
  0x52   :  { %989 = vmatprep.subr.bf16.mxu1 %v738_v16  ;;  %v550_v16 = vld [vmem:[%s3136_s2 + $0x2e8] sm:$0xff]  ;;  %v741_v32 = vpack.c.bf16 %v547_v11, %v545_v10  ;;  %v414_v34 = vpack.c.bf16 %v294_v61, %v286_v12  ;;  %v95_v62 = vld [vmem:[%s3137_s0 + $0x280] sm:$0xff]  ;;  %v807_v5 = vpack.c.bf16 %v679_v52, %v677_v51  ;;  %v683_v12 = vld [vmem:[%s3136_s2 + $0x710] sm:$0xff]  ;;  %v413_v61 = vpack.c.bf16 %v293_v53, %v285_v48 }
  0x53   :  { %1254 = vmatpush1.bf16.msra.mxu0 %v799_v30  ;;  %v678_v30 = vld [vmem:[%s3136_s2 + $0x6e8] sm:$0xff]  ;;  %v744_v42 = vpack.c.bf16 %v552_v21, %v550_v16  ;;  %v103_v63 = vld [vmem:[%s3137_s0 + $0x2c0] sm:$0xff]  ;;  %v688_v16 = vld [vmem:[%s3136_s2 + $0x738] sm:$0xff]  ;;  %v2436_v23 = vmul.f32 %v2003_v19, %v95_v62 }
  0x54   :  { %901 = vmatmul.mubr.bf16.gmra.mrb[8].mxu1 %v393_v36  ;;  %1255 = vmatprep.subr.bf16.mxu0 %v802_v38  ;;  %v96_v36 = vld [vmem:[%s3137_s0 + $0x288] sm:$0xff]  ;;  %v2353_v38 = vmul.f32 %v2003_v19, %v79_v13  ;;  %v99_v1 = vld [vmem:[%s3137_s0 + $0x2a0] sm:$0xff]  ;;  %v812_v29 = vpack.c.bf16 %v688_v16, %v686_v15  ;;  %v687_v37 = vld [vmem:[%s3136_s2 + $0x730] sm:$0xff] }
  0x55   :  { %1167 = vmatmul.mubr.bf16.gmra.mrb[8].mxu0 %v397_v44  ;;  %990 = vmatpush1.bf16.msra.mxu1 %v737_v45  ;;  %v108_v44 = vld [vmem:[%s3137_s0 + $0x2e8] sm:$0xff]  ;;  %v298_v54 = vmul.f32 %v1897_v33, %v96_v36  ;;  %v553_v2 = vld [vmem:[%s3136_s2 + $0x300] sm:$0xff] }
  0x56   :  { %910 = vmatprep.mubr.bf16.mxu1 %v402_v49  ;;  %1176 = vmatprep.mubr.bf16.mxu0 %v406_v50  ;;  %v554_v45 = vld [vmem:[%s3136_s2 + $0x308] sm:$0xff]  ;;  %v556_v49 = vld [vmem:[%s3136_s2 + $0x318] sm:$0xff]  ;;  %v808_v50 = vpack.c.bf16 %v680_v31, %v678_v30  ;;  %v310_v60 = vmul.f32 %v1903_v35, %v108_v44  ;;  %v409_v6 = vpack.c.bf16 %v289_v47, %v2353_v38  ;;  %v107_v8 = vld [vmem:[%s3137_s0 + $0x2e0] sm:$0xff] }
  0x57   :  { %991 = vmatprep.subr.bf16.mxu1 %v740_v56  ;;  %1256 = vmatpush1.bf16.msra.mxu0 %v801_v57  ;;  %v682_v56 = vld [vmem:[%s3136_s2 + $0x708] sm:$0xff]  ;;  %v684_v57 = vld [vmem:[%s3136_s2 + $0x718] sm:$0xff]  ;;  %v681_v11 = vld [vmem:[%s3136_s2 + $0x700] sm:$0xff]  ;;  %v418_v13 = vpack.c.bf16 %v306_v55, %v298_v54  ;;  %v305_v31 = vmul.f32 %v2003_v19, %v103_v63  ;;  %v309_v38 = vmul.f32 %v2021_v26, %v107_v8 }
  0x58   :  { %1257 = vmatprep.subr.bf16.mxu0 %v804_v0  ;;  %v746_v0 = vpack.c.bf16 %v556_v49, %v554_v45  ;;  %v810_v10 = vpack.c.bf16 %v684_v57, %v682_v56  ;;  %v557_v14 = vld [vmem:[%s3136_s2 + $0x320] sm:$0xff]  ;;  %v112_v21 = vld [vmem:[%s3137_s0 + $0x308] sm:$0xff]  ;;  %v809_v30 = vpack.c.bf16 %v683_v12, %v681_v11  ;;  %v692_v45 = vld [vmem:[%s3136_s2 + $0x758] sm:$0xff] }
  0x59   :  { %992 = vmatpush1.bf16.msra.mxu1 %v739_v3  ;;  %v555_v3 = vld [vmem:[%s3136_s2 + $0x310] sm:$0xff]  ;;  %v562_v28 = vld [vmem:[%s3136_s2 + $0x348] sm:$0xff]  ;;  %v685_v36 = vld [vmem:[%s3136_s2 + $0x720] sm:$0xff]  ;;  %v417_v57 = vpack.c.bf16 %v305_v31, %v2436_v23 }
  0x5a   :  { %993 = vmatprep.subr.bf16.mxu1 %v742_v9  ;;  %v560_v9 = vld [vmem:[%s3136_s2 + $0x338] sm:$0xff]  ;;  %v690_v44 = vld [vmem:[%s3136_s2 + $0x748] sm:$0xff]  ;;  %v111_v49 = vld [vmem:[%s3137_s0 + $0x300] sm:$0xff]  ;;  %v811_v56 = vpack.c.bf16 %v687_v37, %v685_v36 }
  0x5b   :  { %1258 = vmatpush1.bf16.msra.mxu0 %v803_v17  ;;  %v422_v17 = vpack.c.bf16 %v310_v60, %v302_v59  ;;  %v748_v24 = vpack.c.bf16 %v560_v9, %v558_v4  ;;  %v115_v51 = vld [vmem:[%s3137_s0 + $0x320] sm:$0xff]  ;;  %v563_v54 = vld [vmem:[%s3136_s2 + $0x350] sm:$0xff]  ;;  %v566_v55 = vld [vmem:[%s3136_s2 + $0x368] sm:$0xff]  ;;  %v814_v60 = vpack.c.bf16 %v692_v45, %v690_v44  ;;  %v313_v11 = vmul.f32 %v2003_v19, %v111_v49 }
  0x5c   :  { %911 = vmatmul.mubr.bf16.gmra.mrb[12].mxu1 %v401_v18  ;;  %1259 = vmatprep.subr.bf16.mxu0 %v806_v22  ;;  %v745_v18 = vpack.c.bf16 %v555_v3, %v553_v2  ;;  %v120_v22 = vld [vmem:[%s3137_s0 + $0x348] sm:$0xff]  ;;  %v561_v53 = vld [vmem:[%s3136_s2 + $0x340] sm:$0xff]  ;;  %v568_v59 = vld [vmem:[%s3136_s2 + $0x378] sm:$0xff] }
  0x5d   :  { %1177 = vmatmul.mubr.bf16.gmra.mrb[12].mxu0 %v405_v25  ;;  %920 = vmatprep.mubr.bf16.mxu1 %v410_v27  ;;  %v116_v25 = vld [vmem:[%s3137_s0 + $0x328] sm:$0xff]  ;;  %v322_v43 = vmul.f32 %v1897_v33, %v120_v22  ;;  %v689_v62 = vld [vmem:[%s3136_s2 + $0x740] sm:$0xff]  ;;  %v691_v63 = vld [vmem:[%s3136_s2 + $0x750] sm:$0xff]  ;;  %v752_v12 = vpack.c.bf16 %v568_v59, %v566_v55 }
  0x5e   :  { %994 = vmatpush1.bf16.msra.mxu1 %v741_v32  ;;  %1186 = vmatprep.mubr.bf16.mxu0 %v414_v34  ;;  %v124_v27 = vld [vmem:[%s3137_s0 + $0x368] sm:$0xff]  ;;  %v301_v32 = vmul.f32 %v2021_v26, %v99_v1  ;;  %v564_v34 = vld [vmem:[%s3136_s2 + $0x358] sm:$0xff]  ;;  %v318_v47 = vmul.f32 %v1903_v35, %v116_v25  ;;  %v813_v15 = vpack.c.bf16 %v691_v63, %v689_v62  ;;  %v695_v22 = vld [vmem:[%s3136_s2 + $0x770] sm:$0xff] }
  0x5f   :  { %995 = vmatprep.subr.bf16.mxu1 %v744_v42  ;;  %1260 = vmatpush1.bf16.msra.mxu0 %v805_v46  ;;  %v314_v42 = vmul.f32 %v1897_v33, %v112_v21  ;;  %v747_v46 = vpack.c.bf16 %v559_v20, %v557_v14  ;;  %v326_v48 = vmul.f32 %v1903_v35, %v124_v27  ;;  %v128_v2 = vld [vmem:[%s3137_s0 + $0x388] sm:$0xff]  ;;  %v696_v4 = vld [vmem:[%s3136_s2 + $0x778] sm:$0xff]  ;;  %v693_v21 = vld [vmem:[%s3136_s2 + $0x760] sm:$0xff] }
  0x60   :  { %1261 = vmatprep.subr.bf16.mxu0 %v808_v50  ;;  %v119_v50 = vld [vmem:[%s3137_s0 + $0x340] sm:$0xff]  ;;  %v750_v52 = vpack.c.bf16 %v564_v34, %v562_v28  ;;  %v694_v3 = vld [vmem:[%s3136_s2 + $0x768] sm:$0xff]  ;;  %v571_v34 = vld [vmem:[%s3136_s2 + $0x390] sm:$0xff] }
  0x61   :  { %v426_v1 = vpack.c.bf16 %v322_v43, %v314_v42  ;;  %v136_v8 = vld [vmem:[%s3137_s0 + $0x3c8] sm:$0xff]  ;;  %v321_v16 = vmul.f32 %v2003_v19, %v119_v50  ;;  %v816_v20 = vpack.c.bf16 %v696_v4, %v694_v3  ;;  %v127_v37 = vld [vmem:[%s3137_s0 + $0x380] sm:$0xff]  ;;  %v576_v42 = vld [vmem:[%s3136_s2 + $0x3b8] sm:$0xff] }
  0x62   :  { %996 = vmatpush1.bf16.msra.mxu1 %v743_v58  ;;  %v123_v58 = vld [vmem:[%s3137_s0 + $0x360] sm:$0xff]  ;;  %v132_v9 = vld [vmem:[%s3137_s0 + $0x3a8] sm:$0xff]  ;;  %v338_v25 = vmul.f32 %v1897_v33, %v136_v8  ;;  %v580_v62 = vld [vmem:[%s3136_s2 + $0x3d8] sm:$0xff] }
  0x63   :  { %997 = vmatprep.subr.bf16.mxu1 %v746_v0  ;;  %1262 = vmatpush1.bf16.msra.mxu0 %v807_v5  ;;  %v421_v0 = vpack.c.bf16 %v309_v38, %v301_v32  ;;  %v430_v5 = vpack.c.bf16 %v326_v48, %v318_v47  ;;  %v570_v14 = vld [vmem:[%s3136_s2 + $0x388] sm:$0xff]  ;;  %v325_v23 = vmul.f32 %v2021_v26, %v123_v58  ;;  %v569_v32 = vld [vmem:[%s3136_s2 + $0x380] sm:$0xff]  ;;  %v579_v8 = vld [vmem:[%s3136_s2 + $0x3d0] sm:$0xff] }
  0x64   :  { %921 = vmatmul.mubr.bf16.gmra.mrb[16].mxu1 %v409_v6  ;;  %1263 = vmatprep.subr.bf16.mxu0 %v810_v10  ;;  %v749_v6 = vpack.c.bf16 %v563_v54, %v561_v53  ;;  %v140_v10 = vld [vmem:[%s3137_s0 + $0x3e8] sm:$0xff]  ;;  %v334_v27 = vmul.f32 %v1903_v35, %v132_v9  ;;  %v425_v36 = vpack.c.bf16 %v321_v16, %v313_v11  ;;  %v135_v45 = vld [vmem:[%s3137_s0 + $0x3c0] sm:$0xff] }
  0x65   :  { %1187 = vmatmul.mubr.bf16.gmra.mrb[16].mxu0 %v413_v61  ;;  %930 = vmatprep.mubr.bf16.mxu1 %v418_v13  ;;  %v565_v61 = vld [vmem:[%s3136_s2 + $0x360] sm:$0xff]  ;;  %v567_v13 = vld [vmem:[%s3136_s2 + $0x370] sm:$0xff]  ;;  %v342_v28 = vmul.f32 %v1903_v35, %v140_v10  ;;  %v574_v38 = vld [vmem:[%s3136_s2 + $0x3a8] sm:$0xff]  ;;  %v753_v49 = vpack.c.bf16 %v571_v34, %v569_v32  ;;  %v337_v58 = vmul.f32 %v2003_v19, %v135_v45 }
  0x66   :  { %1196 = vmatprep.mubr.bf16.mxu0 %v422_v17  ;;  %998 = vmatpush1.bf16.msra.mxu1 %v745_v18  ;;  %v317_v17 = vmul.f32 %v2021_v26, %v115_v51  ;;  %v572_v18 = vld [vmem:[%s3136_s2 + $0x398] sm:$0xff]  ;;  %v139_v47 = vld [vmem:[%s3137_s0 + $0x3e0] sm:$0xff]  ;;  %v144_v50 = vld [vmem:[%s3137_s0 + $0x408] sm:$0xff]  ;;  %v756_v54 = vpack.c.bf16 %v576_v42, %v574_v38 }
  0x67   :  { %999 = vmatprep.subr.bf16.mxu1 %v748_v24  ;;  %1264 = vmatpush1.bf16.msra.mxu0 %v809_v30  ;;  %v330_v24 = vmul.f32 %v1897_v33, %v128_v2  ;;  %v751_v30 = vpack.c.bf16 %v567_v13, %v565_v61  ;;  %v754_v31 = vpack.c.bf16 %v572_v18, %v570_v14  ;;  %v152_v51 = vld [vmem:[%s3137_s0 + $0x448] sm:$0xff]  ;;  %v573_v55 = vld [vmem:[%s3136_s2 + $0x3a0] sm:$0xff] }
  0x68   :  { %1265 = vmatprep.subr.bf16.mxu0 %v812_v29  ;;  %v815_v29 = vpack.c.bf16 %v695_v22, %v693_v21  ;;  %v429_v43 = vpack.c.bf16 %v325_v23, %v317_v17  ;;  %v438_v48 = vpack.c.bf16 %v342_v28, %v334_v27  ;;  %v156_v53 = vld [vmem:[%s3137_s0 + $0x468] sm:$0xff]  ;;  %v341_v63 = vmul.f32 %v2021_v26, %v139_v47  ;;  %v143_v10 = vld [vmem:[%s3137_s0 + $0x400] sm:$0xff]  ;;  %v583_v27 = vld [vmem:[%s3136_s2 + $0x3f0] sm:$0xff] }
  0x69   :  { %v434_v44 = vpack.c.bf16 %v338_v25, %v330_v24  ;;  %v358_v3 = vmul.f32 %v1903_v35, %v156_v53  ;;  %v582_v11 = vld [vmem:[%s3136_s2 + $0x3e8] sm:$0xff]  ;;  %v151_v14 = vld [vmem:[%s3137_s0 + $0x440] sm:$0xff]  ;;  %v345_v28 = vmul.f32 %v2003_v19, %v143_v10 }
  0x6a   :  { %1000 = vmatpush1.bf16.msra.mxu1 %v747_v46  ;;  %v131_v46 = vld [vmem:[%s3137_s0 + $0x3a0] sm:$0xff]  ;;  %v160_v18 = vld [vmem:[%s3137_s0 + $0x488] sm:$0xff] }
  0x6b   :  { %1001 = vmatprep.subr.bf16.mxu1 %v750_v52  ;;  %1266 = vmatpush1.bf16.msra.mxu0 %v811_v56  ;;  %v148_v52 = vld [vmem:[%s3137_s0 + $0x428] sm:$0xff]  ;;  %v575_v56 = vld [vmem:[%s3136_s2 + $0x3b0] sm:$0xff]  ;;  %v333_v59 = vmul.f32 %v2021_v26, %v131_v46  ;;  %v155_v16 = vld [vmem:[%s3137_s0 + $0x460] sm:$0xff]  ;;  %v362_v34 = vmul.f32 %v1897_v33, %v160_v18 }
  0x6c   :  { %931 = vmatmul.mubr.bf16.gmra.mrb[20].mxu1 %v417_v57  ;;  %1267 = vmatprep.subr.bf16.mxu0 %v814_v60  ;;  %v329_v57 = vmul.f32 %v2003_v19, %v127_v37  ;;  %v578_v60 = vld [vmem:[%s3136_s2 + $0x3c8] sm:$0xff]  ;;  %v350_v2 = vmul.f32 %v1903_v35, %v148_v52  ;;  %v755_v4 = vpack.c.bf16 %v575_v56, %v573_v55  ;;  %v581_v25 = vld [vmem:[%s3136_s2 + $0x3e0] sm:$0xff]  ;;  %v33_v18 = vld [vmem:[%s3137_s0 + $0x90] sm:$0xff] }
  0x6d   :  { %1197 = vmatmul.mubr.bf16.gmra.mrb[20].mxu0 %v421_v0  ;;  %940 = vmatprep.mubr.bf16.mxu1 %v426_v1  ;;  %v346_v0 = vmul.f32 %v1897_v33, %v144_v50  ;;  %v354_v1 = vmul.f32 %v1897_v33, %v152_v51  ;;  %v437_v61 = vpack.c.bf16 %v341_v63, %v333_v59  ;;  %v164_v22 = vld [vmem:[%s3137_s0 + $0x4a8] sm:$0xff]  ;;  %v159_v45 = vld [vmem:[%s3137_s0 + $0x480] sm:$0xff]  ;;  %v22_v50 = vld [vmem:[%s3137_s0 + $0x38] sm:$0xff] }
  0x6e   :  { %1206 = vmatprep.mubr.bf16.mxu0 %v430_v5  ;;  %1002 = vmatpush1.bf16.msra.mxu1 %v749_v6  ;;  %v758_v5 = vpack.c.bf16 %v580_v62, %v578_v60  ;;  %v577_v6 = vld [vmem:[%s3136_s2 + $0x3c0] sm:$0xff]  ;;  %v433_v9 = vpack.c.bf16 %v337_v58, %v329_v57  ;;  %v446_v17 = vpack.c.bf16 %v358_v3, %v350_v2  ;;  %v172_v23 = vld [vmem:[%s3137_s0 + $0x4e8] sm:$0xff]  ;;  %v30_v51 = vld [vmem:[%s3137_s0 + $0x78] sm:$0xff] }
  0x6f   :  { %1003 = vmatprep.subr.bf16.mxu1 %v752_v12  ;;  %1268 = vmatpush1.bf16.msra.mxu0 %v813_v15  ;;  %v584_v12 = vld [vmem:[%s3136_s2 + $0x3f8] sm:$0xff]  ;;  %v442_v13 = vpack.c.bf16 %v354_v1, %v346_v0  ;;  %v147_v15 = vld [vmem:[%s3137_s0 + $0x420] sm:$0xff]  ;;  %v757_v21 = vpack.c.bf16 %v579_v8, %v577_v6  ;;  %v357_v32 = vmul.f32 %v2021_v26, %v155_v16  ;;  %v21_v0 = vld [vmem:[%s3137_s0 + $0x30] sm:$0xff] }
  0x70   :  { %1269 = vmatprep.subr.bf16.mxu0 %v816_v20  ;;  %v168_v20 = vld [vmem:[%s3137_s0 + $0x4c8] sm:$0xff]  ;;  %v760_v24 = vpack.c.bf16 %v584_v12, %v582_v11  ;;  %v374_v37 = vmul.f32 %v1903_v35, %v172_v23  ;;  %v759_v38 = vpack.c.bf16 %v583_v27, %v581_v25  ;;  %v167_v46 = vld [vmem:[%s3137_s0 + $0x4c0] sm:$0xff]  ;;  %v361_v52 = vmul.f32 %v2003_v19, %v159_v45  ;;  %v29_v2 = vld [vmem:[%s3137_s0 + $0x70] sm:$0xff] }
  0x71   :  { %v369_v53 = vmul.f32 %v2003_v19, %v167_v46  ;;  %v224_v58 = vmul.f32 %v1918_v40, %v22_v50  ;;  %v232_v59 = vmul.f32 %v1918_v40, %v30_v51  ;;  %v34_v3 = vld [vmem:[%s3137_s0 + $0x98] sm:$0xff]  ;;  %v223_v10 = vmul.f32 %v1973_v7, %v21_v0  ;;  %v45_v23 = vld [vmem:[%s3137_s0 + $0xf0] sm:$0xff] }
  0x72   :  { %1004 = vmatpush1.bf16.msra.mxu1 %v751_v30  ;;  %v353_v30 = vmul.f32 %v2003_v19, %v151_v14  ;;  %v17_v19 = vld [vmem:[%s3137_s0 + $0x10] sm:$0xff]  ;;  %v46_v6 = vld [vmem:[%s3137_s0 + $0xf8] sm:$0xff]  ;;  %v231_v11 = vmul.f32 %v1973_v7, %v29_v2  ;;  %v236_v12 = vmul.f32 %v1915_v39, %v34_v3 }
  0x73   :  { %1005 = vmatprep.subr.bf16.mxu1 %v754_v31  ;;  %1270 = vmatpush1.bf16.msra.mxu0 %v815_v29  ;;  %v349_v31 = vmul.f32 %v2021_v26, %v147_v15  ;;  %v370_v29 = vmul.f32 %v1897_v33, %v168_v20  ;;  %v163_v33 = vld [vmem:[%s3137_s0 + $0x4a0] sm:$0xff]  ;;  %v449_v60 = vpack.c.bf16 %v369_v53, %v361_v52  ;;  %v41_v20 = vld [vmem:[%s3137_s0 + $0xd0] sm:$0xff]  ;;  %v58_v25 = vld [vmem:[%s3137_s0 + $0x158] sm:$0xff] }
  0x74   :  { %941 = vmatmul.mubr.bf16.gmra.mrb[24].mxu1 %v425_v36  ;;  %v366_v36 = vmul.f32 %v1903_v35, %v164_v22  ;;  %v441_v42 = vpack.c.bf16 %v353_v30, %v345_v28  ;;  %v171_v35 = vld [vmem:[%s3137_s0 + $0x4e0] sm:$0xff]  ;;  %v384_v1 = vpack.c.bf16 %v232_v59, %v224_v58  ;;  %v219_v8 = vmul.f32 %v1921_v41, %v17_v19  ;;  %v54_v27 = vld [vmem:[%s3137_s0 + $0x138] sm:$0xff]  ;;  %v49_v45 = vld [vmem:[%s3137_s0 + $0x110] sm:$0xff] }
  0x75   :  { %1207 = vmatmul.mubr.bf16.gmra.mrb[24].mxu0 %v429_v43  ;;  %950 = vmatprep.mubr.bf16.mxu1 %v434_v44  ;;  %v445_v43 = vpack.c.bf16 %v357_v32, %v349_v31  ;;  %v450_v44 = vpack.c.bf16 %v370_v29, %v362_v34  ;;  %v373_v55 = vmul.f32 %v2021_v26, %v171_v35  ;;  %v62_v28 = vld [vmem:[%s3137_s0 + $0x178] sm:$0xff]  ;;  %v57_v46 = vld [vmem:[%s3137_s0 + $0x150] sm:$0xff] }
  0x76   :  { %1216 = vmatprep.mubr.bf16.mxu0 %v438_v48  ;;  %1006 = vmatpush1.bf16.msra.mxu1 %v753_v49  ;;  %v454_v47 = vpack.c.bf16 %v374_v37, %v366_v36  ;;  %v18_v48 = vld [vmem:[%s3137_s0 + $0x18] sm:$0xff]  ;;  %v248_v14 = vmul.f32 %v1918_v40, %v46_v6  ;;  %v383_v16 = vpack.c.bf16 %v231_v11, %v223_v10  ;;  %v61_v35 = vld [vmem:[%s3137_s0 + $0x170] sm:$0xff] }
  0x77   :  { %1007 = vmatprep.subr.bf16.mxu1 %v756_v54  ;;  %v26_v49 = vld [vmem:[%s3137_s0 + $0x58] sm:$0xff]  ;;  %v365_v54 = vmul.f32 %v2021_v26, %v163_v33  ;;  %v220_v56 = vmul.f32 %v1915_v39, %v18_v48  ;;  %v25_v26 = vld [vmem:[%s3137_s0 + $0x50] sm:$0xff]  ;;  %v235_v30 = vmul.f32 %v1921_v41, %v33_v18  ;;  %v243_v31 = vmul.f32 %v1921_v41, %v41_v20 }
  0x78   :  { %v228_v57 = vmul.f32 %v1915_v39, %v26_v49  ;;  %v247_v34 = vmul.f32 %v1973_v7, %v45_v23  ;;  %v260_v36 = vmul.f32 %v1915_v39, %v58_v25  ;;  %v256_v37 = vmul.f32 %v1918_v40, %v54_v27  ;;  %v53_v33 = vld [vmem:[%s3137_s0 + $0x130] sm:$0xff]  ;;  %v66_v48 = vld [vmem:[%s3137_s0 + $0x198] sm:$0xff] }
  0x79   :  { %v453_v62 = vpack.c.bf16 %v373_v55, %v365_v54  ;;  %v74_v49 = vld [vmem:[%s3137_s0 + $0x1d8] sm:$0xff]  ;;  %v251_v52 = vmul.f32 %v1921_v41, %v49_v45  ;;  %v259_v53 = vmul.f32 %v1921_v41, %v57_v46  ;;  %v255_v54 = vmul.f32 %v1973_v7, %v53_v33  ;;  %v65_v19 = vld [vmem:[%s3137_s0 + $0x190] sm:$0xff] }
  0x7a   :  { %1008 = vmatpush1.bf16.msra.mxu1 %v755_v4  ;;  %v380_v63 = vpack.c.bf16 %v228_v57, %v220_v56  ;;  %v42_v4 = vld [vmem:[%s3137_s0 + $0xd8] sm:$0xff]  ;;  %v263_v55 = vmul.f32 %v1973_v7, %v61_v35  ;;  %v268_v56 = vmul.f32 %v1915_v39, %v66_v48  ;;  %v276_v57 = vmul.f32 %v1915_v39, %v74_v49  ;;  %v69_v0 = vld [vmem:[%s3137_s0 + $0x1b0] sm:$0xff] }
  0x7b   :  { %1009 = vmatprep.subr.bf16.mxu1 %v758_v5  ;;  %v38_v5 = vld [vmem:[%s3137_s0 + $0xb8] sm:$0xff]  ;;  %v77_v2 = vld [vmem:[%s3137_s0 + $0x1f0] sm:$0xff]  ;;  %v271_v10 = vmul.f32 %v1973_v7, %v69_v0 }
  0x7c   :  { %951 = vmatmul.mubr.bf16.gmra.mrb[28].mxu1 %v433_v9  ;;  %v227_v9 = vmul.f32 %v1921_v41, %v25_v26  ;;  %v70_v50 = vld [vmem:[%s3137_s0 + $0x1b8] sm:$0xff]  ;;  %v73_v26 = vld [vmem:[%s3137_s0 + $0x1d0] sm:$0xff]  ;;  %v279_v11 = vmul.f32 %v1973_v7, %v77_v2 }
  0x7d   :  { %1217 = vmatmul.mubr.bf16.gmra.mrb[28].mxu0 %v437_v61  ;;  %960 = vmatprep.mubr.bf16.mxu1 %v442_v13  ;;  %v244_v61 = vmul.f32 %v1915_v39, %v42_v4  ;;  %v240_v13 = vmul.f32 %v1918_v40, %v38_v5  ;;  %v78_v51 = vld [vmem:[%s3137_s0 + $0x1f8] sm:$0xff]  ;;  %v272_v58 = vmul.f32 %v1918_v40, %v70_v50  ;;  %v81_v18 = vld [vmem:[%s3137_s0 + $0x210] sm:$0xff] }
  0x7e   :  { %1226 = vmatprep.mubr.bf16.mxu0 %v446_v17  ;;  %1010 = vmatpush1.bf16.msra.mxu1 %v757_v21  ;;  %v379_v15 = vpack.c.bf16 %v227_v9, %v219_v8  ;;  %v37_v21 = vld [vmem:[%s3137_s0 + $0xb0] sm:$0xff]  ;;  %v280_v59 = vmul.f32 %v1918_v40, %v78_v51  ;;  %v82_v3 = vld [vmem:[%s3137_s0 + $0x218] sm:$0xff]  ;;  %v267_v8 = vmul.f32 %v1921_v41, %v65_v19 }
  0x7f   :  { %1011 = vmatprep.subr.bf16.mxu1 %v760_v24  ;;  %v388_v17 = vpack.c.bf16 %v244_v61, %v236_v12  ;;  %v392_v22 = vpack.c.bf16 %v248_v14, %v240_v13  ;;  %v50_v24 = vld [vmem:[%s3137_s0 + $0x118] sm:$0xff]  ;;  %v239_v32 = vmul.f32 %v1973_v7, %v37_v21  ;;  %v275_v9 = vmul.f32 %v1921_v41, %v73_v26  ;;  %v89_v20 = vld [vmem:[%s3137_s0 + $0x250] sm:$0xff] }
  0x80   :  { %v252_v29 = vmul.f32 %v1915_v39, %v50_v24  ;;  %v90_v4 = vld [vmem:[%s3137_s0 + $0x258] sm:$0xff]  ;;  %v284_v12 = vmul.f32 %v1915_v39, %v82_v3  ;;  %v85_v21 = vld [vmem:[%s3137_s0 + $0x230] sm:$0xff] }
  0x81   :  { %v86_v5 = vld [vmem:[%s3137_s0 + $0x238] sm:$0xff]  ;;  %v292_v61 = vmul.f32 %v1915_v39, %v90_v4  ;;  %v93_v23 = vld [vmem:[%s3137_s0 + $0x270] sm:$0xff] }
  0x82   :  { %1012 = vmatpush1.bf16.msra.mxu1 %v759_v38  ;;  %v264_v38 = vmul.f32 %v1918_v40, %v62_v28  ;;  %v94_v6 = vld [vmem:[%s3137_s0 + $0x278] sm:$0xff]  ;;  %v288_v13 = vmul.f32 %v1918_v40, %v86_v5  ;;  %v97_v45 = vld [vmem:[%s3137_s0 + $0x290] sm:$0xff] }
  0x83   :  { %v296_v14 = vmul.f32 %v1918_v40, %v94_v6  ;;  %v98_v24 = vld [vmem:[%s3137_s0 + $0x298] sm:$0xff]  ;;  %v105_v46 = vld [vmem:[%s3137_s0 + $0x2d0] sm:$0xff] }
  0x84   :  { %961 = vmatmul.mubr.bf16.gmra.mrb[32].mxu1 %v441_v42  ;;  %v387_v42 = vpack.c.bf16 %v243_v31, %v235_v30  ;;  %v106_v25 = vld [vmem:[%s3137_s0 + $0x2d8] sm:$0xff]  ;;  %v283_v30 = vmul.f32 %v1921_v41, %v81_v18  ;;  %v291_v31 = vmul.f32 %v1921_v41, %v89_v20  ;;  %v101_v33 = vld [vmem:[%s3137_s0 + $0x2b0] sm:$0xff] }
  0x85   :  { %1227 = vmatmul.mubr.bf16.gmra.mrb[32].mxu0 %v445_v43  ;;  %970 = vmatprep.mubr.bf16.mxu1 %v450_v44  ;;  %v391_v43 = vpack.c.bf16 %v247_v34, %v239_v32  ;;  %v396_v44 = vpack.c.bf16 %v260_v36, %v252_v29  ;;  %v102_v27 = vld [vmem:[%s3137_s0 + $0x2b8] sm:$0xff]  ;;  %v287_v32 = vmul.f32 %v1973_v7, %v85_v21  ;;  %v109_v35 = vld [vmem:[%s3137_s0 + $0x2f0] sm:$0xff] }
  0x86   :  { %1236 = vmatprep.mubr.bf16.mxu0 %v454_v47  ;;  %v400_v47 = vpack.c.bf16 %v264_v38, %v256_v37  ;;  %v110_v28 = vld [vmem:[%s3137_s0 + $0x2f8] sm:$0xff]  ;;  %v295_v34 = vmul.f32 %v1973_v7, %v93_v23  ;;  %v300_v29 = vmul.f32 %v1915_v39, %v98_v24  ;;  %v308_v36 = vmul.f32 %v1915_v39, %v106_v25  ;;  %v113_v19 = vld [vmem:[%s3137_s0 + $0x310] sm:$0xff] }
  0x87   :  { %v304_v37 = vmul.f32 %v1918_v40, %v102_v27  ;;  %v312_v38 = vmul.f32 %v1918_v40, %v110_v28  ;;  %v114_v48 = vld [vmem:[%s3137_s0 + $0x318] sm:$0xff]  ;;  %v121_v26 = vld [vmem:[%s3137_s0 + $0x350] sm:$0xff] }
  0x88   :  { %v122_v49 = vld [vmem:[%s3137_s0 + $0x358] sm:$0xff]  ;;  %v117_v0 = vld [vmem:[%s3137_s0 + $0x330] sm:$0xff] }
  0x89   :  { %v118_v50 = vld [vmem:[%s3137_s0 + $0x338] sm:$0xff]  ;;  %v125_v2 = vld [vmem:[%s3137_s0 + $0x370] sm:$0xff] }
  0x8a   :  { %v126_v51 = vld [vmem:[%s3137_s0 + $0x378] sm:$0xff]  ;;  %v129_v18 = vld [vmem:[%s3137_s0 + $0x390] sm:$0xff] }
  0x8b   :  { %v130_v3 = vld [vmem:[%s3137_s0 + $0x398] sm:$0xff]  ;;  %v137_v20 = vld [vmem:[%s3137_s0 + $0x3d0] sm:$0xff] }
  0x8c   :  { %971 = vmatmul.mubr.bf16.gmra.mrb[36].mxu1 %v449_v60  ;;  %v395_v60 = vpack.c.bf16 %v259_v53, %v251_v52  ;;  %v299_v52 = vmul.f32 %v1921_v41, %v97_v45  ;;  %v307_v53 = vmul.f32 %v1921_v41, %v105_v46  ;;  %v138_v4 = vld [vmem:[%s3137_s0 + $0x3d8] sm:$0xff]  ;;  %v133_v21 = vld [vmem:[%s3137_s0 + $0x3b0] sm:$0xff] }
  0x8d   :  { %1237 = vmatmul.mubr.bf16.gmra.mrb[36].mxu0 %v453_v62  ;;  %1013 = vmatprep.mubr.bf16.mxu1 %v380_v63  ;;  %v399_v62 = vpack.c.bf16 %v263_v55, %v255_v54  ;;  %v404_v63 = vpack.c.bf16 %v276_v57, %v268_v56  ;;  %v303_v54 = vmul.f32 %v1973_v7, %v101_v33  ;;  %v134_v5 = vld [vmem:[%s3137_s0 + $0x3b8] sm:$0xff]  ;;  %v141_v23 = vld [vmem:[%s3137_s0 + $0x3f0] sm:$0xff] }
  0x8e   :  { %1425 = vmatprep.mubr.msk.bf16.mxu0 %vm817_vm0, %v384_v1  ;;  %v408_v1 = vpack.c.bf16 %v280_v59, %v272_v58  ;;  %v311_v55 = vmul.f32 %v1973_v7, %v109_v35  ;;  %v316_v56 = vmul.f32 %v1915_v39, %v114_v48  ;;  %v324_v57 = vmul.f32 %v1915_v39, %v122_v49  ;;  %v142_v6 = vld [vmem:[%s3137_s0 + $0x3f8] sm:$0xff]  ;;  %v145_v45 = vld [vmem:[%s3137_s0 + $0x410] sm:$0xff] }
  0x8f   :  { %v320_v58 = vmul.f32 %v1918_v40, %v118_v50  ;;  %v328_v59 = vmul.f32 %v1918_v40, %v126_v51  ;;  %v146_v24 = vld [vmem:[%s3137_s0 + $0x418] sm:$0xff]  ;;  %v153_v46 = vld [vmem:[%s3137_s0 + $0x450] sm:$0xff] }
  0x90   :  { %v154_v25 = vld [vmem:[%s3137_s0 + $0x458] sm:$0xff]  ;;  %v149_v33 = vld [vmem:[%s3137_s0 + $0x430] sm:$0xff] }
  0x91   :  { %v150_v27 = vld [vmem:[%s3137_s0 + $0x438] sm:$0xff]  ;;  %v157_v35 = vld [vmem:[%s3137_s0 + $0x470] sm:$0xff] }
  0x92   :  { %v158_v28 = vld [vmem:[%s3137_s0 + $0x478] sm:$0xff] }
  0x93   :  { %v162_v48 = vld [vmem:[%s3137_s0 + $0x498] sm:$0xff] }
  0x94   :  { %1014 = vmatmul.mubr.bf16.vlgmr.msra.gmra.mrb[0].mxu1 %v379_v15  ;;  %v403_v15 = vpack.c.bf16 %v275_v9, %v267_v8  ;;  %v315_v8 = vmul.f32 %v1921_v41, %v113_v19  ;;  %v323_v9 = vmul.f32 %v1921_v41, %v121_v26  ;;  %v170_v49 = vld [vmem:[%s3137_s0 + $0x4d8] sm:$0xff]  ;;  %v161_v19 = vld [vmem:[%s3137_s0 + $0x490] sm:$0xff] }
  0x95   :  { %1280 = vmatmul.mubr.bf16.vlgmr.msra.gmra.mrb[0].mxu0 %v383_v16  ;;  %1023 = vmatprep.mubr.bf16.mxu1 %v388_v17  ;;  %v407_v16 = vpack.c.bf16 %v279_v11, %v271_v10  ;;  %v412_v17 = vpack.c.bf16 %v292_v61, %v284_v12  ;;  %v319_v10 = vmul.f32 %v1973_v7, %v117_v0  ;;  %v166_v50 = vld [vmem:[%s3137_s0 + $0x4b8] sm:$0xff]  ;;  %v169_v26 = vld [vmem:[%s3137_s0 + $0x4d0] sm:$0xff] }
  0x96   :  { %1426 = vmatprep.mubr.msk.bf16.mxu0 %vm817_vm0, %v392_v22  ;;  %v416_v22 = vpack.c.bf16 %v296_v14, %v288_v13  ;;  %v327_v11 = vmul.f32 %v1973_v7, %v125_v2  ;;  %v332_v12 = vmul.f32 %v1915_v39, %v130_v3  ;;  %v340_v61 = vmul.f32 %v1915_v39, %v138_v4  ;;  %v174_v51 = vld [vmem:[%s3137_s0 + $0x4f8] sm:$0xff] }
  0x97   :  { %v336_v13 = vmul.f32 %v1918_v40, %v134_v5  ;;  %v344_v14 = vmul.f32 %v1918_v40, %v142_v6  ;;  %v371_v2 = vmul.f32 %v1921_v41, %v169_v26 }
  0x9c   :  { %1024 = vmatmul.mubr.bf16.gmra.mrb[4].mxu1 %v387_v42  ;;  %v411_v42 = vpack.c.bf16 %v291_v31, %v283_v30  ;;  %v331_v30 = vmul.f32 %v1921_v41, %v129_v18  ;;  %v339_v31 = vmul.f32 %v1921_v41, %v137_v20 }
  0x9d   :  { %1290 = vmatmul.mubr.bf16.gmra.mrb[4].mxu0 %v391_v43  ;;  %1033 = vmatprep.mubr.bf16.mxu1 %v396_v44  ;;  %v415_v43 = vpack.c.bf16 %v295_v34, %v287_v32  ;;  %v420_v44 = vpack.c.bf16 %v308_v36, %v300_v29  ;;  %v335_v32 = vmul.f32 %v1973_v7, %v133_v21 }
  0x9e   :  { %1427 = vmatprep.mubr.msk.bf16.mxu0 %vm817_vm0, %v400_v47  ;;  %v424_v47 = vpack.c.bf16 %v312_v38, %v304_v37  ;;  %v343_v34 = vmul.f32 %v1973_v7, %v141_v23  ;;  %v348_v29 = vmul.f32 %v1915_v39, %v146_v24  ;;  %v356_v36 = vmul.f32 %v1915_v39, %v154_v25 }
  0x9f   :  { %v352_v37 = vmul.f32 %v1918_v40, %v150_v27  ;;  %v360_v38 = vmul.f32 %v1918_v40, %v158_v28 }
  0xa4   :  { %1034 = vmatmul.mubr.bf16.gmra.mrb[8].mxu1 %v395_v60  ;;  %v419_v60 = vpack.c.bf16 %v307_v53, %v299_v52  ;;  %v347_v52 = vmul.f32 %v1921_v41, %v145_v45  ;;  %v355_v53 = vmul.f32 %v1921_v41, %v153_v46 }
  0xa5   :  { %1300 = vmatmul.mubr.bf16.gmra.mrb[8].mxu0 %v399_v62  ;;  %1043 = vmatprep.mubr.bf16.mxu1 %v404_v63  ;;  %v423_v62 = vpack.c.bf16 %v311_v55, %v303_v54  ;;  %v428_v63 = vpack.c.bf16 %v324_v57, %v316_v56  ;;  %v351_v54 = vmul.f32 %v1973_v7, %v149_v33 }
  0xa6   :  { %1428 = vmatprep.mubr.msk.bf16.mxu0 %vm817_vm0, %v408_v1  ;;  %v432_v1 = vpack.c.bf16 %v328_v59, %v320_v58  ;;  %v359_v55 = vmul.f32 %v1973_v7, %v157_v35  ;;  %v364_v56 = vmul.f32 %v1915_v39, %v162_v48  ;;  %v372_v57 = vmul.f32 %v1915_v39, %v170_v49  ;;  %v165_v39 = vld [vmem:[%s3137_s0 + $0x4b0] sm:$0xff] }
  0xa7   :  { %v368_v58 = vmul.f32 %v1918_v40, %v166_v50  ;;  %v376_v59 = vmul.f32 %v1918_v40, %v174_v51  ;;  %v173_v40 = vld [vmem:[%s3137_s0 + $0x4f0] sm:$0xff]  ;;  %v367_v3 = vmul.f32 %v1973_v7, %v165_v39 }
  0xa8   :  { %v375_v4 = vmul.f32 %v1973_v7, %v173_v40 }
  0xa9   :  { %v456_v0 = vpack.c.bf16 %v376_v59, %v368_v58 }
  0xaa   :  { %v455_v6 = vpack.c.bf16 %v375_v4, %v367_v3 }
  0xac   :  { %1044 = vmatmul.mubr.bf16.gmra.mrb[12].mxu1 %v403_v15  ;;  %v427_v15 = vpack.c.bf16 %v323_v9, %v315_v8 }
  0xad   :  { %1310 = vmatmul.mubr.bf16.gmra.mrb[12].mxu0 %v407_v16  ;;  %1053 = vmatprep.mubr.bf16.mxu1 %v412_v17  ;;  %v431_v16 = vpack.c.bf16 %v327_v11, %v319_v10  ;;  %v436_v17 = vpack.c.bf16 %v340_v61, %v332_v12 }
  0xae   :  { %1429 = vmatprep.mubr.msk.bf16.mxu0 %vm817_vm0, %v416_v22  ;;  %v440_v22 = vpack.c.bf16 %v344_v14, %v336_v13 }
  0xb4   :  { %1054 = vmatmul.mubr.bf16.gmra.mrb[16].mxu1 %v411_v42  ;;  %v435_v42 = vpack.c.bf16 %v339_v31, %v331_v30 }
  0xb5   :  { %1320 = vmatmul.mubr.bf16.gmra.mrb[16].mxu0 %v415_v43  ;;  %1063 = vmatprep.mubr.bf16.mxu1 %v420_v44  ;;  %v439_v43 = vpack.c.bf16 %v343_v34, %v335_v32  ;;  %v444_v44 = vpack.c.bf16 %v356_v36, %v348_v29 }
  0xb6   :  { %1430 = vmatprep.mubr.msk.bf16.mxu0 %vm817_vm0, %v424_v47  ;;  %v448_v47 = vpack.c.bf16 %v360_v38, %v352_v37 }
  0xbc   :  { %1064 = vmatmul.mubr.bf16.gmra.mrb[20].mxu1 %v419_v60  ;;  %v443_v60 = vpack.c.bf16 %v355_v53, %v347_v52 }
  0xbd   :  { %1330 = vmatmul.mubr.bf16.gmra.mrb[20].mxu0 %v423_v62  ;;  %1073 = vmatprep.mubr.bf16.mxu1 %v428_v63  ;;  %v447_v62 = vpack.c.bf16 %v359_v55, %v351_v54  ;;  %v452_v63 = vpack.c.bf16 %v372_v57, %v364_v56 }
  0xbe   :  { %1431 = vmatprep.mubr.msk.bf16.mxu0 %vm817_vm0, %v432_v1  ;;  %v363_v1 = vmul.f32 %v1921_v41, %v161_v19 }
  0xc0   :  { %v451_v5 = vpack.c.bf16 %v371_v2, %v363_v1 }
  0xc4   :  { %1074 = vmatmul.mubr.bf16.gmra.mrb[24].mxu1 %v427_v15 }
  0xc5   :  { %1340 = vmatmul.mubr.bf16.gmra.mrb[24].mxu0 %v431_v16  ;;  %1083 = vmatprep.mubr.bf16.mxu1 %v436_v17 }
  0xc6   :  { %1432 = vmatprep.mubr.msk.bf16.mxu0 %vm817_vm0, %v440_v22 }
  0xcc   :  { %1084 = vmatmul.mubr.bf16.gmra.mrb[28].mxu1 %v435_v42 }
  0xcd   :  { %1350 = vmatmul.mubr.bf16.gmra.mrb[28].mxu0 %v439_v43  ;;  %1093 = vmatprep.mubr.bf16.mxu1 %v444_v44 }
  0xce   :  { %1433 = vmatprep.mubr.msk.bf16.mxu0 %vm817_vm0, %v448_v47 }
  0xd4   :  { %1094 = vmatmul.mubr.bf16.gmra.mrb[32].mxu1 %v443_v60 }
  0xd5   :  { %1360 = vmatmul.mubr.bf16.gmra.mrb[32].mxu0 %v447_v62  ;;  %1103 = vmatprep.mubr.bf16.mxu1 %v452_v63 }
  0xd6   :  { %1434 = vmatprep.mubr.msk.bf16.mxu0 %vm817_vm0, %v456_v0 }
  0xdc   :  { %1104 = vmatmul.mubr.bf16.gmra.mrb[36].mxu1 %v451_v5 }
  0xdd   :  { %1370 = vmatmul.mubr.bf16.gmra.mrb[36].mxu0 %v455_v6 }
 0x167   :  { %v1015_v8 = vpop.f32.mrb[0].mxu1 }
 0x168   :  { %v1281_v9 = vpop.f32.mrb[0].mxu0  ;;  %v1017_v10 = vpop.f32.mrb[1].mxu1 }
 0x169   :  { %v1435_v11 = vadd.f32 %v1281_v9, %v1015_v8  ;;  %v1283_v12 = vpop.f32.mrb[1].mxu0  ;;  %v1019_v61 = vpop.f32.mrb[2].mxu1 }
 0x16a   :  { %v1436_v41 = vadd.f32 %v1283_v12, %v1017_v10  ;;  %v1285_v13 = vpop.f32.mrb[2].mxu0  ;;  %v1021_v14 = vpop.f32.mrb[3].mxu1 }
 0x16b   :  { %1380 = vst [vmem:[%s3139_s3] sm:$0xff] %v1435_v11  ;;  %v1437_v7 = vadd.f32 %v1285_v13, %v1019_v61  ;;  %v1287_v15 = vpop.f32.mrb[3].mxu0 }
 0x16c   :  { %1382 = vst.msk [vmem:[%s3139_s3 + $0x8] sm:$0xff] %vm1381_vm1, %v1436_v41  ;;  %v1438_v16 = vadd.f32 %v1287_v15, %v1021_v14 }
 0x16d   :  { %1383 = vst [vmem:[%s3139_s3 + $0x10] sm:$0xff] %v1437_v7 }
 0x16e   :  { %1384 = vst.msk [vmem:[%s3139_s3 + $0x18] sm:$0xff] %vm1381_vm1, %v1438_v16 }
 0x16f   :  { %v1025_v17 = vpop.f32.mrb[4].mxu1 }
 0x170   :  { %v1291_v18 = vpop.f32.mrb[4].mxu0  ;;  %v1027_v20 = vpop.f32.mrb[5].mxu1 }
 0x171   :  { %v1439_v21 = vadd.f32 %v1291_v18, %v1025_v17  ;;  %v1293_v22 = vpop.f32.mrb[5].mxu0  ;;  %v1029_v23 = vpop.f32.mrb[6].mxu1 }
 0x172   :  { %v1440_v24 = vadd.f32 %v1293_v22, %v1027_v20  ;;  %v1295_v25 = vpop.f32.mrb[6].mxu0  ;;  %v1031_v27 = vpop.f32.mrb[7].mxu1 }
 0x173   :  { %1385 = vst [vmem:[%s3139_s3 + $0x20] sm:$0xff] %v1439_v21  ;;  %v1441_v28 = vadd.f32 %v1295_v25, %v1029_v23  ;;  %v1297_v30 = vpop.f32.mrb[7].mxu0 }
 0x174   :  { %1386 = vst.msk [vmem:[%s3139_s3 + $0x28] sm:$0xff] %vm1381_vm1, %v1440_v24  ;;  %v1442_v31 = vadd.f32 %v1297_v30, %v1031_v27 }
 0x175   :  { %1387 = vst [vmem:[%s3139_s3 + $0x30] sm:$0xff] %v1441_v28 }
 0x176   :  { %1388 = vst.msk [vmem:[%s3139_s3 + $0x38] sm:$0xff] %vm1381_vm1, %v1442_v31 }
 0x177   :  { %v1035_v32 = vpop.f32.mrb[8].mxu1 }
 0x178   :  { %v1301_v34 = vpop.f32.mrb[8].mxu0  ;;  %v1037_v29 = vpop.f32.mrb[9].mxu1 }
 0x179   :  { %v1443_v36 = vadd.f32 %v1301_v34, %v1035_v32  ;;  %v1303_v37 = vpop.f32.mrb[9].mxu0  ;;  %v1039_v38 = vpop.f32.mrb[10].mxu1 }
 0x17a   :  { %v1444_v42 = vadd.f32 %v1303_v37, %v1037_v29  ;;  %v1305_v43 = vpop.f32.mrb[10].mxu0  ;;  %v1041_v44 = vpop.f32.mrb[11].mxu1 }
 0x17b   :  { %1389 = vst [vmem:[%s3139_s3 + $0x40] sm:$0xff] %v1443_v36  ;;  %v1445_v45 = vadd.f32 %v1305_v43, %v1039_v38  ;;  %v1307_v46 = vpop.f32.mrb[11].mxu0 }
 0x17c   :  { %1390 = vst.msk [vmem:[%s3139_s3 + $0x48] sm:$0xff] %vm1381_vm1, %v1444_v42  ;;  %v1446_v33 = vadd.f32 %v1307_v46, %v1041_v44 }
 0x17d   :  { %1391 = vst [vmem:[%s3139_s3 + $0x50] sm:$0xff] %v1445_v45 }
 0x17e   :  { %1392 = vst.msk [vmem:[%s3139_s3 + $0x58] sm:$0xff] %vm1381_vm1, %v1446_v33 }
 0x17f   :  { %v1045_v47 = vpop.f32.mrb[12].mxu1 }
 0x180   :  { %v1311_v35 = vpop.f32.mrb[12].mxu0  ;;  %v1047_v48 = vpop.f32.mrb[13].mxu1 }
 0x181   :  { %v1447_v49 = vadd.f32 %v1311_v35, %v1045_v47  ;;  %v1313_v50 = vpop.f32.mrb[13].mxu0  ;;  %v1049_v51 = vpop.f32.mrb[14].mxu1 }
 0x182   :  { %v1448_v52 = vadd.f32 %v1313_v50, %v1047_v48  ;;  %v1315_v53 = vpop.f32.mrb[14].mxu0  ;;  %v1051_v54 = vpop.f32.mrb[15].mxu1 }
 0x183   :  { %1393 = vst [vmem:[%s3139_s3 + $0x60] sm:$0xff] %v1447_v49  ;;  %v1449_v55 = vadd.f32 %v1315_v53, %v1049_v51  ;;  %v1317_v56 = vpop.f32.mrb[15].mxu0 }
 0x184   :  { %1394 = vst.msk [vmem:[%s3139_s3 + $0x68] sm:$0xff] %vm1381_vm1, %v1448_v52  ;;  %v1450_v57 = vadd.f32 %v1317_v56, %v1051_v54 }
 0x185   :  { %1395 = vst [vmem:[%s3139_s3 + $0x70] sm:$0xff] %v1449_v55 }
 0x186   :  { %1396 = vst.msk [vmem:[%s3139_s3 + $0x78] sm:$0xff] %vm1381_vm1, %v1450_v57 }
 0x187   :  { %v1055_v58 = vpop.f32.mrb[16].mxu1 }
 0x188   :  { %v1321_v59 = vpop.f32.mrb[16].mxu0  ;;  %v1057_v60 = vpop.f32.mrb[17].mxu1 }
 0x189   :  { %v1451_v62 = vadd.f32 %v1321_v59, %v1055_v58  ;;  %v1323_v63 = vpop.f32.mrb[17].mxu0  ;;  %v1059_v19 = vpop.f32.mrb[18].mxu1 }
 0x18a   :  { %v1452_v26 = vadd.f32 %v1323_v63, %v1057_v60  ;;  %v1325_v0 = vpop.f32.mrb[18].mxu0  ;;  %v1061_v39 = vpop.f32.mrb[19].mxu1 }
 0x18b   :  { %1397 = vst [vmem:[%s3139_s3 + $0x80] sm:$0xff] %v1451_v62  ;;  %v1453_v40 = vadd.f32 %v1325_v0, %v1059_v19  ;;  %v1327_v1 = vpop.f32.mrb[19].mxu0 }
 0x18c   :  { %1398 = vst.msk [vmem:[%s3139_s3 + $0x88] sm:$0xff] %vm1381_vm1, %v1452_v26  ;;  %v1454_v2 = vadd.f32 %v1327_v1, %v1061_v39 }
 0x18d   :  { %1399 = vst [vmem:[%s3139_s3 + $0x90] sm:$0xff] %v1453_v40 }
 0x18e   :  { %1400 = vst.msk [vmem:[%s3139_s3 + $0x98] sm:$0xff] %vm1381_vm1, %v1454_v2 }
 0x18f   :  { %v1065_v3 = vpop.f32.mrb[20].mxu1 }
 0x190   :  { %v1331_v4 = vpop.f32.mrb[20].mxu0  ;;  %v1067_v5 = vpop.f32.mrb[21].mxu1 }
 0x191   :  { %v1455_v6 = vadd.f32 %v1331_v4, %v1065_v3  ;;  %v1333_v8 = vpop.f32.mrb[21].mxu0  ;;  %v1069_v9 = vpop.f32.mrb[22].mxu1 }
 0x192   :  { %v1456_v10 = vadd.f32 %v1333_v8, %v1067_v5  ;;  %v1335_v11 = vpop.f32.mrb[22].mxu0  ;;  %v1071_v12 = vpop.f32.mrb[23].mxu1 }
 0x193   :  { %1401 = vst [vmem:[%s3139_s3 + $0xa0] sm:$0xff] %v1455_v6  ;;  %v1457_v61 = vadd.f32 %v1335_v11, %v1069_v9  ;;  %v1337_v41 = vpop.f32.mrb[23].mxu0 }
 0x194   :  { %1402 = vst.msk [vmem:[%s3139_s3 + $0xa8] sm:$0xff] %vm1381_vm1, %v1456_v10  ;;  %v1458_v13 = vadd.f32 %v1337_v41, %v1071_v12 }
 0x195   :  { %1403 = vst [vmem:[%s3139_s3 + $0xb0] sm:$0xff] %v1457_v61 }
 0x196   :  { %1404 = vst.msk [vmem:[%s3139_s3 + $0xb8] sm:$0xff] %vm1381_vm1, %v1458_v13 }
 0x197   :  { %v1075_v14 = vpop.f32.mrb[24].mxu1 }
 0x198   :  { %v1341_v7 = vpop.f32.mrb[24].mxu0  ;;  %v1077_v15 = vpop.f32.mrb[25].mxu1 }
 0x199   :  { %v1459_v16 = vadd.f32 %v1341_v7, %v1075_v14  ;;  %v1343_v17 = vpop.f32.mrb[25].mxu0  ;;  %v1079_v18 = vpop.f32.mrb[26].mxu1 }
 0x19a   :  { %v1460_v20 = vadd.f32 %v1343_v17, %v1077_v15  ;;  %v1345_v21 = vpop.f32.mrb[26].mxu0  ;;  %v1081_v22 = vpop.f32.mrb[27].mxu1 }
 0x19b   :  { %1405 = vst [vmem:[%s3139_s3 + $0xc0] sm:$0xff] %v1459_v16  ;;  %v1461_v23 = vadd.f32 %v1345_v21, %v1079_v18  ;;  %v1347_v24 = vpop.f32.mrb[27].mxu0 }
 0x19c   :  { %1406 = vst.msk [vmem:[%s3139_s3 + $0xc8] sm:$0xff] %vm1381_vm1, %v1460_v20  ;;  %v1462_v25 = vadd.f32 %v1347_v24, %v1081_v22 }
 0x19d   :  { %1407 = vst [vmem:[%s3139_s3 + $0xd0] sm:$0xff] %v1461_v23 }
 0x19e   :  { %1408 = vst.msk [vmem:[%s3139_s3 + $0xd8] sm:$0xff] %vm1381_vm1, %v1462_v25 }
 0x19f   :  { %v1085_v27 = vpop.f32.mrb[28].mxu1 }
 0x1a0   :  { %v1351_v28 = vpop.f32.mrb[28].mxu0  ;;  %v1087_v30 = vpop.f32.mrb[29].mxu1 }
 0x1a1   :  { %v1463_v31 = vadd.f32 %v1351_v28, %v1085_v27  ;;  %v1353_v32 = vpop.f32.mrb[29].mxu0  ;;  %v1089_v34 = vpop.f32.mrb[30].mxu1 }
 0x1a2   :  { %v1464_v29 = vadd.f32 %v1353_v32, %v1087_v30  ;;  %v1355_v36 = vpop.f32.mrb[30].mxu0  ;;  %v1091_v37 = vpop.f32.mrb[31].mxu1 }
 0x1a3   :  { %1409 = vst [vmem:[%s3139_s3 + $0xe0] sm:$0xff] %v1463_v31  ;;  %v1465_v38 = vadd.f32 %v1355_v36, %v1089_v34  ;;  %v1357_v42 = vpop.f32.mrb[31].mxu0 }
 0x1a4   :  { %1410 = vst.msk [vmem:[%s3139_s3 + $0xe8] sm:$0xff] %vm1381_vm1, %v1464_v29  ;;  %v1466_v43 = vadd.f32 %v1357_v42, %v1091_v37 }
 0x1a5   :  { %1411 = vst [vmem:[%s3139_s3 + $0xf0] sm:$0xff] %v1465_v38 }
 0x1a6   :  { %1412 = vst.msk [vmem:[%s3139_s3 + $0xf8] sm:$0xff] %vm1381_vm1, %v1466_v43 }
 0x1a7   :  { %v1095_v44 = vpop.f32.mrb[32].mxu1 }
 0x1a8   :  { %v1361_v45 = vpop.f32.mrb[32].mxu0  ;;  %v1097_v46 = vpop.f32.mrb[33].mxu1 }
 0x1a9   :  { %v1467_v33 = vadd.f32 %v1361_v45, %v1095_v44  ;;  %v1363_v47 = vpop.f32.mrb[33].mxu0  ;;  %v1099_v35 = vpop.f32.mrb[34].mxu1 }
 0x1aa   :  { %v1468_v48 = vadd.f32 %v1363_v47, %v1097_v46  ;;  %v1365_v49 = vpop.f32.mrb[34].mxu0  ;;  %v1101_v50 = vpop.f32.mrb[35].mxu1 }
 0x1ab   :  { %1413 = vst [vmem:[%s3139_s3 + $0x100] sm:$0xff] %v1467_v33  ;;  %v1469_v51 = vadd.f32 %v1365_v49, %v1099_v35  ;;  %v1367_v52 = vpop.f32.mrb[35].mxu0 }
 0x1ac   :  { %1414 = vst.msk [vmem:[%s3139_s3 + $0x108] sm:$0xff] %vm1381_vm1, %v1468_v48  ;;  %v1470_v53 = vadd.f32 %v1367_v52, %v1101_v50 }
 0x1ad   :  { %1415 = vst [vmem:[%s3139_s3 + $0x110] sm:$0xff] %v1469_v51 }
 0x1ae   :  { %1416 = vst.msk [vmem:[%s3139_s3 + $0x118] sm:$0xff] %vm1381_vm1, %v1470_v53 }
 0x1af   :  { %v1105_v54 = vpop.f32.mrb[36].mxu1 }
 0x1b0   :  { %v1371_v55 = vpop.f32.mrb[36].mxu0  ;;  %v1107_v56 = vpop.f32.mrb[37].mxu1 }
 0x1b1   :  { %v1471_v57 = vadd.f32 %v1371_v55, %v1105_v54  ;;  %v1373_v58 = vpop.f32.mrb[37].mxu0  ;;  %v1109_v59 = vpop.f32.mrb[38].mxu1 }
 0x1b2   :  { %v1472_v60 = vadd.f32 %v1373_v58, %v1107_v56  ;;  %v1375_v62 = vpop.f32.mrb[38].mxu0  ;;  %v1111_v63 = vpop.f32.mrb[39].mxu1 }
 0x1b3   :  { %1417 = vst [vmem:[%s3139_s3 + $0x120] sm:$0xff] %v1471_v57  ;;  %v1473_v19 = vadd.f32 %v1375_v62, %v1109_v59  ;;  %v1377_v26 = vpop.f32.mrb[39].mxu0 }
 0x1b4   :  { %1418 = vst.msk [vmem:[%s3139_s3 + $0x128] sm:$0xff] %vm1381_vm1, %v1472_v60  ;;  %v1474_v0 = vadd.f32 %v1377_v26, %v1111_v63 }
 0x1b5   :  { %1419 = vst [vmem:[%s3139_s3 + $0x130] sm:$0xff] %v1473_v19 }
 0x1b6   :  { %1420 = vst.msk [vmem:[%s3139_s3 + $0x138] sm:$0xff] %vm1381_vm1, %v1474_v0 }

</bundles_post_ra>
